<compile_context>
chip_gen: v7x
topology: tpu7x:2x2x1
jax: 0.10.0
libtpu: 0.0.40
codegen_flags: <defaults>
</compile_context>

<pallas_src>
import jax
import jax.numpy as jnp
from jax import lax
from jax.experimental import pallas as pl
from jax.experimental.pallas import tpu as pltpu

# ---- small, module-consistent sizes ----
B = 2          # batch
C = 4          # image channels
SP = 16        # spatial (H = W = 16)
S = SP * SP    # flattened spatial = 256
F = 64         # "resnet" feature dim (stand-in for resnet.fc.in_features)
E = 32         # embed_size
H = 32         # hidden_size
V = 64         # vocab_size
L = 8          # caption length
EPS = 1e-5     # BatchNorm1d eps

# ---- packed parameter slab layout (f32, 128 lanes, 8-aligned row starts) ----
ROW_BL, ROW_GAMMA, ROW_BETA, ROW_BLSTM, ROW_BOUT = 0, 1, 2, 3, 4
WC0 = 8              # (F, C)   encoder channel-mix weight (stored as F rows)
WL0 = WC0 + F        # (F, E)   self.linear weight
EMB0 = WL0 + F       # (V, E)   self.embed table
WIH0 = EMB0 + V      # (E, 4H)  LSTM W_ih^T
WHH0 = WIH0 + E      # (H, 4H)  LSTM W_hh^T
WOUT0 = WHH0 + H     # (H, V)   self.linear_lstm weight
SLAB_ROWS = WOUT0 + H   # 296


def fused_kernel(caps_ref, x_ref, slab_ref, out_ref, hs_ref):
    f32, bf16 = jnp.float32, jnp.bfloat16

    # ---------------- carve the packed parameter slab (static slices) ----------------
    bl = slab_ref[ROW_BL:ROW_BL + 1, 0:E]                       # (1, E)
    gamma = slab_ref[ROW_GAMMA:ROW_GAMMA + 1, 0:E]               # (1, E)
    beta = slab_ref[ROW_BETA:ROW_BETA + 1, 0:E]                  # (1, E)
    b_row = slab_ref[ROW_BLSTM:ROW_BLSTM + 1, :]                 # (1, 4H) == b_ih + b_hh
    bout = slab_ref[ROW_BOUT:ROW_BOUT + 1, 0:V]                  # (1, V)
    wc_bf = slab_ref[WC0:WC0 + F, 0:C].astype(bf16)              # (F, C)
    wl_bf = slab_ref[WL0:WL0 + F, 0:E].astype(bf16)              # (F, E)
    wih_bf = slab_ref[WIH0:WIH0 + E, :].astype(bf16)             # (E, 4H)
    whh_bf = slab_ref[WHH0:WHH0 + H, :].astype(bf16)             # (H, 4H)
    wout_bf = slab_ref[WOUT0:WOUT0 + H, 0:V].astype(bf16)        # (H, V)

    # ---------------- encoder: synthetic 1x1-conv + ReLU + global-avg-pool -----------
    # TODO(synk): the pretrained ResNet-101 backbone has no clean in-kernel
    # equivalent; it is replaced by this synthetic encoder with the same
    # (B, feat_dim) interface.
    x0 = x_ref[0:C, :]                                           # (C, S)  batch 0
    x1 = x_ref[C:2 * C, :]                                       # (C, S)  batch 1
    x_cbs = jnp.concatenate([x0, x1], axis=1).astype(bf16)       # (C, B*S) lane-dense
    hidden = jnp.maximum(
        jnp.dot(wc_bf, x_cbs, preferred_element_type=f32), 0.0)  # (F, B*S)
    hidden_t = jnp.transpose(hidden)                             # (B*S, F) aligned transpose

    # global average pool as an MXU matmul against an in-kernel (B, B*S) 1/S matrix
    row = lax.broadcasted_iota(jnp.int32, (B, B * S), 0)
    col = lax.broadcasted_iota(jnp.int32, (B, B * S), 1)
    d = col - row * S
    pool_bf = jnp.where((d >= 0) & (d < S),
                        jnp.float32(1.0 / S), jnp.float32(0.0)).astype(bf16)
    pooled = jnp.dot(pool_bf, hidden_t.astype(bf16),
                     preferred_element_type=f32)                 # (B, F)

    feat = jnp.dot(pooled.astype(bf16), wl_bf,
                   preferred_element_type=f32) + bl              # self.linear -> (B, E)

    # self.bn: BatchNorm1d, training-mode batch statistics (module default .train()).
    # TODO(synk): eval-mode running_mean/running_var path not implemented.
    mean = jnp.mean(feat, axis=0, keepdims=True)
    var = jnp.mean((feat - mean) ** 2, axis=0, keepdims=True)
    feat = (feat - mean) * lax.rsqrt(var + EPS) * gamma + beta   # (B, E)

    # ---------------- embedding gather (dynamic rows from the slab, via SMEM ids) ----
    # step t>=1 consumes embed(captions[:, t-1]); captions[:, L-1] is dropped,
    # matching torch.cat((feat.unsqueeze(1), embeddings[:, :-1, :]), dim=1).
    # Token ids are assumed in [0, V) (same contract as nn.Embedding).
    emb_rows = []
    for t in range(L - 1):
        for b in range(B):
            tok = caps_ref[b, t]
            emb_rows.append(slab_ref[pl.ds(EMB0 + tok, 1), :])   # (1, 128)
    embs = jnp.concatenate(emb_rows, axis=0)[:, 0:E]             # ((L-1)*B, E) time-major

    # ---------------- hoisted LSTM input projection (bias folded, outside the loop) --
    xg_feat = jnp.dot(feat.astype(bf16), wih_bf,
                      preferred_element_type=f32) + b_row        # (B, 4H)
    xg_embs = jnp.dot(embs.astype(bf16), wih_bf,
                      preferred_element_type=f32) + b_row        # ((L-1)*B, 4H)

    lane = lax.broadcasted_iota(jnp.int32, (B, 4 * H), 1)
    is_g = (lane >= 2 * H) & (lane < 3 * H)                      # tanh lanes (gate g)
    pre_scale = jnp.where(is_g, jnp.float32(1.0), jnp.float32(0.5))   # hoisted constant

    h = jnp.zeros((B, H), f32)
    c = jnp.zeros((B, H), f32)
    h_bf = h.astype(bf16)
    # L is a static Python int -> fully unrolled recurrence; only h @ W_hh stays on
    # the loop-carried critical path (one bf16 MXU push + one EUP tanh per step).
    for t in range(L):
        xg_t = xg_feat if t == 0 else xg_embs[(t - 1) * B:t * B, :]
        gates = xg_t + jnp.dot(h_bf, whh_bf, preferred_element_type=f32)   # (B, 4H)
        # single-tanh trick: sigmoid(x) = 0.5 * tanh(0.5 x) + 0.5
        tg = jnp.tanh(gates * pre_scale)
        act = jnp.where(is_g, tg, 0.5 * tg + 0.5)
        i_g = act[:, 0 * H:1 * H]
        f_g = act[:, 1 * H:2 * H]
        g_g = act[:, 2 * H:3 * H]
        o_g = act[:, 3 * H:4 * H]
        c = f_g * c + i_g * g_g
        h = o_g * jnp.tanh(c)
        h_bf = h.astype(bf16)
        # store h batch-major (row = b*L + t) so the output is already (B, L, V)
        for b in range(B):
            hs_ref[b * L + t:b * L + t + 1, :] = h[b:b + 1, :]

    # ---------------- hoisted output projection: one matmul for all timesteps --------
    hs_all = hs_ref[...].astype(bf16)                            # (B*L, H) batch-major
    logits = jnp.dot(hs_all, wout_bf,
                     preferred_element_type=f32) + bout          # self.linear_lstm
    out_ref[...] = logits.reshape(B, L, V)                       # leading-dim split only


def pack_params(params):
    """One-time (outside-jit) packing of all parameters into a single f32 slab."""
    (wc_fc, wl, bl, gamma, beta, embed_table, wih, whh, b_lstm, wout, bout) = params
    slab = jnp.zeros((SLAB_ROWS, 128), jnp.float32)

    def put(s, r, a):
        return lax.dynamic_update_slice(s, jnp.asarray(a, jnp.float32), (r, 0))

    slab = put(slab, ROW_BL, bl)
    slab = put(slab, ROW_GAMMA, gamma)
    slab = put(slab, ROW_BETA, beta)
    slab = put(slab, ROW_BLSTM, b_lstm)
    slab = put(slab, ROW_BOUT, bout)
    slab = put(slab, WC0, wc_fc)
    slab = put(slab, WL0, wl)
    slab = put(slab, EMB0, embed_table)
    slab = put(slab, WIH0, wih)
    slab = put(slab, WHH0, whh)
    slab = put(slab, WOUT0, wout)
    return slab


def image_captions_net_forward(images_nchw, captions, slab):
    # plain row-major reshape of NCHW -> (B*C, S): lane-dense, no wrapper transpose
    x_flat = images_nchw.reshape(B * C, S)
    caps = captions.astype(jnp.int32)          # no-op when already int32

    return pl.pallas_call(
        fused_kernel,
        out_shape=jax.ShapeDtypeStruct((B, L, V), jnp.float32),
        grid_spec=pltpu.PrefetchScalarGridSpec(
            num_scalar_prefetch=1,
            grid=(1,),
            in_specs=[
                pl.BlockSpec((B * C, S), lambda i, caps: (0, 0)),        # image
                pl.BlockSpec((SLAB_ROWS, 128), lambda i, caps: (0, 0)),  # packed params
            ],
            out_specs=pl.BlockSpec((B, L, V), lambda i, caps: (0, 0, 0)),
            scratch_shapes=[pltpu.VMEM((B * L, H), jnp.float32)],        # per-step h store
        ),
        # if batch ever grows, add a leading "parallel" axis over batch tiles (v7x 2nd TC)
        compiler_params=pltpu.CompilerParams(dimension_semantics=("arbitrary",)),
    )(caps, x_flat, slab)


if __name__ == "__main__":
    key = jax.random.PRNGKey(0)
    keys = jax.random.split(key, 12)

    # inputs (forward takes x = (image_batch, captions_batch))
    images = jax.random.normal(keys[0], (B, C, SP, SP), jnp.float32)     # NCHW, PyTorch-style
    captions = jax.random.randint(keys[1], (B, L), 0, V, dtype=jnp.int32)

    # deterministic parameter init (shapes follow __init__; weights are synthetic)
    wc_fc = jax.random.normal(keys[2], (F, C), jnp.float32) * 0.1        # encoder stand-in (F, C)
    wl = jax.random.normal(keys[3], (F, E), jnp.float32) * 0.1           # self.linear
    bl = jax.random.normal(keys[4], (1, E), jnp.float32) * 0.1
    gamma = jnp.ones((1, E), jnp.float32)                                # self.bn weight
    beta = jnp.zeros((1, E), jnp.float32)                                # self.bn bias
    embed_table = jax.random.normal(keys[5], (V, E), jnp.float32) * 0.1  # self.embed
    wih = jax.random.normal(keys[6], (E, 4 * H), jnp.float32) * 0.1      # LSTM W_ih^T
    whh = jax.random.normal(keys[7], (H, 4 * H), jnp.float32) * 0.1      # LSTM W_hh^T
    b_lstm = jax.random.normal(keys[8], (1, 4 * H), jnp.float32) * 0.1   # b_ih + b_hh
    wout = jax.random.normal(keys[9], (H, V), jnp.float32) * 0.1         # self.linear_lstm
    bout = jax.random.normal(keys[10], (1, V), jnp.float32) * 0.1

    # pack once, outside the jitted forward (no per-call packing HLOs)
    slab = pack_params((wc_fc, wl, bl, gamma, beta, embed_table,
                        wih, whh, b_lstm, wout, bout))

    forward = jax.jit(image_captions_net_forward)
    outputs = forward(images, captions, slab)
    jax.block_until_ready(outputs)
    assert outputs.shape == (B, L, V), outputs.shape
    print("KERNEL_OK")
</pallas_src>

<mosaic_0001>
module attributes {stable_mosaic.version = 11 : i64} {
  func.func @fused_kernel(%arg0: i32, %arg1: memref<2x8xi32, #tpu.memory_space<smem>>, %arg2: memref<8x256xf32, #tpu.memory_space<vmem>>, %arg3: memref<296x128xf32, #tpu.memory_space<vmem>>, %arg4: memref<2x8x64xf32, #tpu.memory_space<vmem>>, %arg5: memref<16x32xf32, #tpu.memory_space<vmem>>) attributes {dimension_semantics = [#tpu.dimension_semantics<arbitrary>], iteration_bounds = array<i64: 1>, scalar_prefetch = 1 : i64, scratch_operands = 1 : i64, tpu.core_type = #tpu.core_type<tc>, window_params = [{pipeline_mode = #tpu.pipeline_mode<synchronous>, transform_indices = @transform_0, window_bounds = array<i64: 8, 256>}, {pipeline_mode = #tpu.pipeline_mode<synchronous>, transform_indices = @transform_1, window_bounds = array<i64: 296, 128>}, {pipeline_mode = #tpu.pipeline_mode<synchronous>, transform_indices = @transform_2, window_bounds = array<i64: 2, 8, 64>}]} {
    %c0 = arith.constant 0 : index
    %c0_0 = arith.constant 0 : index
    %0 = vector.load %arg3[%c0, %c0_0] : memref<296x128xf32, #tpu.memory_space<vmem>>, vector<1x32xf32>
    %c1 = arith.constant 1 : index
    %c0_1 = arith.constant 0 : index
    %1 = vector.load %arg3[%c1, %c0_1] : memref<296x128xf32, #tpu.memory_space<vmem>>, vector<1x32xf32>
    %c2 = arith.constant 2 : index
    %c0_2 = arith.constant 0 : index
    %2 = vector.load %arg3[%c2, %c0_2] : memref<296x128xf32, #tpu.memory_space<vmem>>, vector<1x32xf32>
    %c3 = arith.constant 3 : index
    %c0_3 = arith.constant 0 : index
    %3 = vector.load %arg3[%c3, %c0_3] : memref<296x128xf32, #tpu.memory_space<vmem>>, vector<1x128xf32>
    %c4 = arith.constant 4 : index
    %c0_4 = arith.constant 0 : index
    %4 = vector.load %arg3[%c4, %c0_4] : memref<296x128xf32, #tpu.memory_space<vmem>>, vector<1x64xf32>
    %c8 = arith.constant 8 : index
    %c0_5 = arith.constant 0 : index
    %5 = vector.load %arg3[%c8, %c0_5] : memref<296x128xf32, #tpu.memory_space<vmem>>, vector<64x4xf32>
    %6 = arith.truncf %5 : vector<64x4xf32> to vector<64x4xbf16>
    %c72 = arith.constant 72 : index
    %c0_6 = arith.constant 0 : index
    %7 = vector.load %arg3[%c72, %c0_6] : memref<296x128xf32, #tpu.memory_space<vmem>>, vector<64x32xf32>
    %8 = arith.truncf %7 : vector<64x32xf32> to vector<64x32xbf16>
    %c200 = arith.constant 200 : index
    %c0_7 = arith.constant 0 : index
    %9 = vector.load %arg3[%c200, %c0_7] : memref<296x128xf32, #tpu.memory_space<vmem>>, vector<32x128xf32>
    %10 = arith.truncf %9 : vector<32x128xf32> to vector<32x128xbf16>
    %c232 = arith.constant 232 : index
    %c0_8 = arith.constant 0 : index
    %11 = vector.load %arg3[%c232, %c0_8] : memref<296x128xf32, #tpu.memory_space<vmem>>, vector<32x128xf32>
    %12 = arith.truncf %11 : vector<32x128xf32> to vector<32x128xbf16>
    %c264 = arith.constant 264 : index
    %c0_9 = arith.constant 0 : index
    %13 = vector.load %arg3[%c264, %c0_9] : memref<296x128xf32, #tpu.memory_space<vmem>>, vector<32x64xf32>
    %14 = arith.truncf %13 : vector<32x64xf32> to vector<32x64xbf16>
    %c0_10 = arith.constant 0 : index
    %c0_11 = arith.constant 0 : index
    %15 = vector.load %arg2[%c0_10, %c0_11] : memref<8x256xf32, #tpu.memory_space<vmem>>, vector<4x256xf32>
    %c4_12 = arith.constant 4 : index
    %c0_13 = arith.constant 0 : index
    %16 = vector.load %arg2[%c4_12, %c0_13] : memref<8x256xf32, #tpu.memory_space<vmem>>, vector<4x256xf32>
    %17 = tpu.concatenate %15, %16 in 1 : vector<4x256xf32>, vector<4x256xf32> -> vector<4x512xf32>
    %18 = arith.truncf %17 : vector<4x512xf32> to vector<4x512xbf16>
    %cst = arith.constant dense<0.000000e+00> : vector<64x512xf32>
    %19 = tpu.matmul %6, %18, %cst {dimension_numbers = #tpu.dot_dimension_numbers<[1], [0], [0], [1], [0, 0, 1, 1], [], []>} : vector<64x4xbf16>, vector<4x512xbf16>, vector<64x512xf32> -> vector<64x512xf32>
    %cst_14 = arith.constant 0.000000e+00 : f32
    %20 = vector.broadcast %cst_14 : f32 to vector<64x512xf32>
    %21 = arith.maximumf %19, %20 : vector<64x512xf32>
    %22 = tpu.transpose %21, [1, 0] : vector<64x512xf32> -> vector<512x64xf32>
    %23 = tpu.iota {dimensions = array<i32: 0>} : vector<2x512xi32>
    %24 = tpu.iota {dimensions = array<i32: 1>} : vector<2x512xi32>
    %c256_i32 = arith.constant 256 : i32
    %25 = vector.broadcast %c256_i32 : i32 to vector<2x512xi32>
    %26 = arith.muli %23, %25 : vector<2x512xi32>
    %27 = arith.subi %24, %26 : vector<2x512xi32>
    %c0_i32 = arith.constant 0 : i32
    %28 = vector.broadcast %c0_i32 : i32 to vector<2x512xi32>
    %29 = arith.cmpi sge, %27, %28 : vector<2x512xi32>
    %c256_i32_15 = arith.constant 256 : i32
    %30 = vector.broadcast %c256_i32_15 : i32 to vector<2x512xi32>
    %31 = arith.cmpi slt, %27, %30 : vector<2x512xi32>
    %32 = arith.andi %29, %31 : vector<2x512xi1>
    %cst_16 = arith.constant 3.906250e-03 : f32
    %cst_17 = arith.constant 0.000000e+00 : f32
    %33 = vector.broadcast %cst_16 : f32 to vector<2x512xf32>
    %34 = vector.broadcast %cst_17 : f32 to vector<2x512xf32>
    %35 = arith.select %32, %33, %34 : vector<2x512xi1>, vector<2x512xf32>
    %36 = arith.truncf %35 : vector<2x512xf32> to vector<2x512xbf16>
    %37 = arith.truncf %22 : vector<512x64xf32> to vector<512x64xbf16>
    %cst_18 = arith.constant dense<0.000000e+00> : vector<2x64xf32>
    %38 = tpu.matmul %36, %37, %cst_18 {dimension_numbers = #tpu.dot_dimension_numbers<[1], [0], [0], [1], [0, 0, 1, 1], [], []>} : vector<2x512xbf16>, vector<512x64xbf16>, vector<2x64xf32> -> vector<2x64xf32>
    %39 = arith.truncf %38 : vector<2x64xf32> to vector<2x64xbf16>
    %cst_19 = arith.constant dense<0.000000e+00> : vector<2x32xf32>
    %40 = tpu.matmul %39, %8, %cst_19 {dimension_numbers = #tpu.dot_dimension_numbers<[1], [0], [0], [1], [0, 0, 1, 1], [], []>} : vector<2x64xbf16>, vector<64x32xbf16>, vector<2x32xf32> -> vector<2x32xf32>
    %41 = vector.broadcast %0 : vector<1x32xf32> to vector<2x32xf32>
    %42 = arith.addf %40, %41 : vector<2x32xf32>
    %cst_20 = arith.constant dense<0.000000e+00> : vector<32xf32>
    %43 = vector.multi_reduction <add>, %42, %cst_20 [0] : vector<2x32xf32> to vector<32xf32>
    %44 = vector.shape_cast %43 : vector<32xf32> to vector<1x32xf32>
    %cst_21 = arith.constant 2.000000e+00 : f32
    %45 = vector.broadcast %cst_21 : f32 to vector<1x32xf32>
    %46 = arith.divf %44, %45 : vector<1x32xf32>
    %47 = vector.broadcast %46 : vector<1x32xf32> to vector<2x32xf32>
    %48 = arith.subf %42, %47 : vector<2x32xf32>
    %49 = arith.mulf %48, %48 : vector<2x32xf32>
    %cst_22 = arith.constant dense<0.000000e+00> : vector<32xf32>
    %50 = vector.multi_reduction <add>, %49, %cst_22 [0] : vector<2x32xf32> to vector<32xf32>
    %51 = vector.shape_cast %50 : vector<32xf32> to vector<1x32xf32>
    %cst_23 = arith.constant 2.000000e+00 : f32
    %52 = vector.broadcast %cst_23 : f32 to vector<1x32xf32>
    %53 = arith.divf %51, %52 : vector<1x32xf32>
    %54 = vector.broadcast %46 : vector<1x32xf32> to vector<2x32xf32>
    %55 = arith.subf %42, %54 : vector<2x32xf32>
    %cst_24 = arith.constant 9.99999974E-6 : f32
    %56 = vector.broadcast %cst_24 : f32 to vector<1x32xf32>
    %57 = arith.addf %53, %56 : vector<1x32xf32>
    %58 = math.rsqrt %57 : vector<1x32xf32>
    %59 = vector.broadcast %58 : vector<1x32xf32> to vector<2x32xf32>
    %60 = arith.mulf %55, %59 : vector<2x32xf32>
    %61 = vector.broadcast %1 : vector<1x32xf32> to vector<2x32xf32>
    %62 = arith.mulf %60, %61 : vector<2x32xf32>
    %63 = vector.broadcast %2 : vector<1x32xf32> to vector<2x32xf32>
    %64 = arith.addf %62, %63 : vector<2x32xf32>
    %c0_25 = arith.constant 0 : index
    %c0_26 = arith.constant 0 : index
    %65 = memref.load %arg1[%c0_25, %c0_26] : memref<2x8xi32, #tpu.memory_space<smem>>
    %c136_i32 = arith.constant 136 : i32
    %66 = arith.addi %c136_i32, %65 : i32
    %67 = arith.index_cast %66 : i32 to index
    %c0_27 = arith.constant 0 : index
    %68 = vector.load %arg3[%67, %c0_27] : memref<296x128xf32, #tpu.memory_space<vmem>>, vector<1x128xf32>
    %c1_28 = arith.constant 1 : index
    %c0_29 = arith.constant 0 : index
    %69 = memref.load %arg1[%c1_28, %c0_29] : memref<2x8xi32, #tpu.memory_space<smem>>
    %c136_i32_30 = arith.constant 136 : i32
    %70 = arith.addi %c136_i32_30, %69 : i32
    %71 = arith.index_cast %70 : i32 to index
    %c0_31 = arith.constant 0 : index
    %72 = vector.load %arg3[%71, %c0_31] : memref<296x128xf32, #tpu.memory_space<vmem>>, vector<1x128xf32>
    %c0_32 = arith.constant 0 : index
    %c1_33 = arith.constant 1 : index
    %73 = memref.load %arg1[%c0_32, %c1_33] : memref<2x8xi32, #tpu.memory_space<smem>>
    %c136_i32_34 = arith.constant 136 : i32
    %74 = arith.addi %c136_i32_34, %73 : i32
    %75 = arith.index_cast %74 : i32 to index
    %c0_35 = arith.constant 0 : index
    %76 = vector.load %arg3[%75, %c0_35] : memref<296x128xf32, #tpu.memory_space<vmem>>, vector<1x128xf32>
    %c1_36 = arith.constant 1 : index
    %c1_37 = arith.constant 1 : index
    %77 = memref.load %arg1[%c1_36, %c1_37] : memref<2x8xi32, #tpu.memory_space<smem>>
    %c136_i32_38 = arith.constant 136 : i32
    %78 = arith.addi %c136_i32_38, %77 : i32
    %79 = arith.index_cast %78 : i32 to index
    %c0_39 = arith.constant 0 : index
    %80 = vector.load %arg3[%79, %c0_39] : memref<296x128xf32, #tpu.memory_space<vmem>>, vector<1x128xf32>
    %c0_40 = arith.constant 0 : index
    %c2_41 = arith.constant 2 : index
    %81 = memref.load %arg1[%c0_40, %c2_41] : memref<2x8xi32, #tpu.memory_space<smem>>
    %c136_i32_42 = arith.constant 136 : i32
    %82 = arith.addi %c136_i32_42, %81 : i32
    %83 = arith.index_cast %82 : i32 to index
    %c0_43 = arith.constant 0 : index
    %84 = vector.load %arg3[%83, %c0_43] : memref<296x128xf32, #tpu.memory_space<vmem>>, vector<1x128xf32>
    %c1_44 = arith.constant 1 : index
    %c2_45 = arith.constant 2 : index
    %85 = memref.load %arg1[%c1_44, %c2_45] : memref<2x8xi32, #tpu.memory_space<smem>>
    %c136_i32_46 = arith.constant 136 : i32
    %86 = arith.addi %c136_i32_46, %85 : i32
    %87 = arith.index_cast %86 : i32 to index
    %c0_47 = arith.constant 0 : index
    %88 = vector.load %arg3[%87, %c0_47] : memref<296x128xf32, #tpu.memory_space<vmem>>, vector<1x128xf32>
    %c0_48 = arith.constant 0 : index
    %c3_49 = arith.constant 3 : index
    %89 = memref.load %arg1[%c0_48, %c3_49] : memref<2x8xi32, #tpu.memory_space<smem>>
    %c136_i32_50 = arith.constant 136 : i32
    %90 = arith.addi %c136_i32_50, %89 : i32
    %91 = arith.index_cast %90 : i32 to index
    %c0_51 = arith.constant 0 : index
    %92 = vector.load %arg3[%91, %c0_51] : memref<296x128xf32, #tpu.memory_space<vmem>>, vector<1x128xf32>
    %c1_52 = arith.constant 1 : index
    %c3_53 = arith.constant 3 : index
    %93 = memref.load %arg1[%c1_52, %c3_53] : memref<2x8xi32, #tpu.memory_space<smem>>
    %c136_i32_54 = arith.constant 136 : i32
    %94 = arith.addi %c136_i32_54, %93 : i32
    %95 = arith.index_cast %94 : i32 to index
    %c0_55 = arith.constant 0 : index
    %96 = vector.load %arg3[%95, %c0_55] : memref<296x128xf32, #tpu.memory_space<vmem>>, vector<1x128xf32>
    %c0_56 = arith.constant 0 : index
    %c4_57 = arith.constant 4 : index
    %97 = memref.load %arg1[%c0_56, %c4_57] : memref<2x8xi32, #tpu.memory_space<smem>>
    %c136_i32_58 = arith.constant 136 : i32
    %98 = arith.addi %c136_i32_58, %97 : i32
    %99 = arith.index_cast %98 : i32 to index
    %c0_59 = arith.constant 0 : index
    %100 = vector.load %arg3[%99, %c0_59] : memref<296x128xf32, #tpu.memory_space<vmem>>, vector<1x128xf32>
    %c1_60 = arith.constant 1 : index
    %c4_61 = arith.constant 4 : index
    %101 = memref.load %arg1[%c1_60, %c4_61] : memref<2x8xi32, #tpu.memory_space<smem>>
    %c136_i32_62 = arith.constant 136 : i32
    %102 = arith.addi %c136_i32_62, %101 : i32
    %103 = arith.index_cast %102 : i32 to index
    %c0_63 = arith.constant 0 : index
    %104 = vector.load %arg3[%103, %c0_63] : memref<296x128xf32, #tpu.memory_space<vmem>>, vector<1x128xf32>
    %c0_64 = arith.constant 0 : index
    %c5 = arith.constant 5 : index
    %105 = memref.load %arg1[%c0_64, %c5] : memref<2x8xi32, #tpu.memory_space<smem>>
    %c136_i32_65 = arith.constant 136 : i32
    %106 = arith.addi %c136_i32_65, %105 : i32
    %107 = arith.index_cast %106 : i32 to index
    %c0_66 = arith.constant 0 : index
    %108 = vector.load %arg3[%107, %c0_66] : memref<296x128xf32, #tpu.memory_space<vmem>>, vector<1x128xf32>
    %c1_67 = arith.constant 1 : index
    %c5_68 = arith.constant 5 : index
    %109 = memref.load %arg1[%c1_67, %c5_68] : memref<2x8xi32, #tpu.memory_space<smem>>
    %c136_i32_69 = arith.constant 136 : i32
    %110 = arith.addi %c136_i32_69, %109 : i32
    %111 = arith.index_cast %110 : i32 to index
    %c0_70 = arith.constant 0 : index
    %112 = vector.load %arg3[%111, %c0_70] : memref<296x128xf32, #tpu.memory_space<vmem>>, vector<1x128xf32>
    %c0_71 = arith.constant 0 : index
    %c6 = arith.constant 6 : index
    %113 = memref.load %arg1[%c0_71, %c6] : memref<2x8xi32, #tpu.memory_space<smem>>
    %c136_i32_72 = arith.constant 136 : i32
    %114 = arith.addi %c136_i32_72, %113 : i32
    %115 = arith.index_cast %114 : i32 to index
    %c0_73 = arith.constant 0 : index
    %116 = vector.load %arg3[%115, %c0_73] : memref<296x128xf32, #tpu.memory_space<vmem>>, vector<1x128xf32>
    %c1_74 = arith.constant 1 : index
    %c6_75 = arith.constant 6 : index
    %117 = memref.load %arg1[%c1_74, %c6_75] : memref<2x8xi32, #tpu.memory_space<smem>>
    %c136_i32_76 = arith.constant 136 : i32
    %118 = arith.addi %c136_i32_76, %117 : i32
    %119 = arith.index_cast %118 : i32 to index
    %c0_77 = arith.constant 0 : index
    %120 = vector.load %arg3[%119, %c0_77] : memref<296x128xf32, #tpu.memory_space<vmem>>, vector<1x128xf32>
    %121 = tpu.concatenate %68, %72, %76, %80, %84, %88, %92, %96, %100, %104, %108, %112, %116, %120 in 0 : vector<1x128xf32>, vector<1x128xf32>, vector<1x128xf32>, vector<1x128xf32>, vector<1x128xf32>, vector<1x128xf32>, vector<1x128xf32>, vector<1x128xf32>, vector<1x128xf32>, vector<1x128xf32>, vector<1x128xf32>, vector<1x128xf32>, vector<1x128xf32>, vector<1x128xf32> -> vector<14x128xf32>
    %122 = vector.extract_strided_slice %121 {offsets = [0, 0], sizes = [14, 32], strides = [1, 1]} : vector<14x128xf32> to vector<14x32xf32>
    %123 = arith.truncf %64 : vector<2x32xf32> to vector<2x32xbf16>
    %cst_78 = arith.constant dense<0.000000e+00> : vector<2x128xf32>
    %124 = tpu.matmul %123, %10, %cst_78 {dimension_numbers = #tpu.dot_dimension_numbers<[1], [0], [0], [1], [0, 0, 1, 1], [], []>} : vector<2x32xbf16>, vector<32x128xbf16>, vector<2x128xf32> -> vector<2x128xf32>
    %125 = vector.broadcast %3 : vector<1x128xf32> to vector<2x128xf32>
    %126 = arith.addf %124, %125 : vector<2x128xf32>
    %127 = arith.truncf %122 : vector<14x32xf32> to vector<14x32xbf16>
    %cst_79 = arith.constant dense<0.000000e+00> : vector<14x128xf32>
    %128 = tpu.matmul %127, %10, %cst_79 {dimension_numbers = #tpu.dot_dimension_numbers<[1], [0], [0], [1], [0, 0, 1, 1], [], []>} : vector<14x32xbf16>, vector<32x128xbf16>, vector<14x128xf32> -> vector<14x128xf32>
    %129 = vector.broadcast %3 : vector<1x128xf32> to vector<14x128xf32>
    %130 = arith.addf %128, %129 : vector<14x128xf32>
    %131 = tpu.iota {dimensions = array<i32: 1>} : vector<2x128xi32>
    %c64_i32 = arith.constant 64 : i32
    %132 = vector.broadcast %c64_i32 : i32 to vector<2x128xi32>
    %133 = arith.cmpi sge, %131, %132 : vector<2x128xi32>
    %c96_i32 = arith.constant 96 : i32
    %134 = vector.broadcast %c96_i32 : i32 to vector<2x128xi32>
    %135 = arith.cmpi slt, %131, %134 : vector<2x128xi32>
    %136 = arith.andi %133, %135 : vector<2x128xi1>
    %cst_80 = arith.constant 1.000000e+00 : f32
    %cst_81 = arith.constant 5.000000e-01 : f32
    %137 = vector.broadcast %cst_80 : f32 to vector<2x128xf32>
    %138 = vector.broadcast %cst_81 : f32 to vector<2x128xf32>
    %139 = arith.select %136, %137, %138 : vector<2x128xi1>, vector<2x128xf32>
    %cst_82 = arith.constant 0.000000e+00 : f32
    %140 = vector.broadcast %cst_82 : f32 to vector<2x32xf32>
    %cst_83 = arith.constant 0.000000e+00 : f32
    %141 = vector.broadcast %cst_83 : f32 to vector<2x32xf32>
    %142 = arith.truncf %140 : vector<2x32xf32> to vector<2x32xbf16>
    %cst_84 = arith.constant dense<0.000000e+00> : vector<2x128xf32>
    %143 = tpu.matmul %142, %12, %cst_84 {dimension_numbers = #tpu.dot_dimension_numbers<[1], [0], [0], [1], [0, 0, 1, 1], [], []>} : vector<2x32xbf16>, vector<32x128xbf16>, vector<2x128xf32> -> vector<2x128xf32>
    %144 = arith.addf %126, %143 : vector<2x128xf32>
    %145 = arith.mulf %144, %139 : vector<2x128xf32>
    %146 = math.tanh %145 : vector<2x128xf32>
    %cst_85 = arith.constant 5.000000e-01 : f32
    %147 = vector.broadcast %cst_85 : f32 to vector<2x128xf32>
    %148 = arith.mulf %147, %146 : vector<2x128xf32>
    %cst_86 = arith.constant 5.000000e-01 : f32
    %149 = vector.broadcast %cst_86 : f32 to vector<2x128xf32>
    %150 = arith.addf %148, %149 : vector<2x128xf32>
    %151 = arith.select %136, %146, %150 : vector<2x128xi1>, vector<2x128xf32>
    %152 = vector.extract_strided_slice %151 {offsets = [0, 0], sizes = [2, 32], strides = [1, 1]} : vector<2x128xf32> to vector<2x32xf32>
    %153 = vector.extract_strided_slice %151 {offsets = [0, 32], sizes = [2, 32], strides = [1, 1]} : vector<2x128xf32> to vector<2x32xf32>
    %154 = vector.extract_strided_slice %151 {offsets = [0, 64], sizes = [2, 32], strides = [1, 1]} : vector<2x128xf32> to vector<2x32xf32>
    %155 = vector.extract_strided_slice %151 {offsets = [0, 96], sizes = [2, 32], strides = [1, 1]} : vector<2x128xf32> to vector<2x32xf32>
    %156 = arith.mulf %153, %141 : vector<2x32xf32>
    %157 = arith.mulf %152, %154 : vector<2x32xf32>
    %158 = arith.addf %156, %157 : vector<2x32xf32>
    %159 = math.tanh %158 : vector<2x32xf32>
    %160 = arith.mulf %155, %159 : vector<2x32xf32>
    %161 = arith.truncf %160 : vector<2x32xf32> to vector<2x32xbf16>
    %162 = vector.extract_strided_slice %160 {offsets = [0, 0], sizes = [1, 32], strides = [1, 1]} : vector<2x32xf32> to vector<1x32xf32>
    %c0_87 = arith.constant 0 : index
    %c0_88 = arith.constant 0 : index
    %163 = vector.load %arg5[%c0_87, %c0_88] : memref<16x32xf32, #tpu.memory_space<vmem>>, vector<1x32xf32>
    tpu.vector_store %arg5[%c0_87, %c0_88], %162 {strides = array<i32>} : memref<16x32xf32, #tpu.memory_space<vmem>>, vector<1x32xf32>,
    %164 = vector.extract_strided_slice %160 {offsets = [1, 0], sizes = [1, 32], strides = [1, 1]} : vector<2x32xf32> to vector<1x32xf32>
    %c8_89 = arith.constant 8 : index
    %c0_90 = arith.constant 0 : index
    %165 = vector.load %arg5[%c8_89, %c0_90] : memref<16x32xf32, #tpu.memory_space<vmem>>, vector<1x32xf32>
    tpu.vector_store %arg5[%c8_89, %c0_90], %164 {strides = array<i32>} : memref<16x32xf32, #tpu.memory_space<vmem>>, vector<1x32xf32>,
    %166 = vector.extract_strided_slice %130 {offsets = [0, 0], sizes = [2, 128], strides = [1, 1]} : vector<14x128xf32> to vector<2x128xf32>
    %cst_91 = arith.constant dense<0.000000e+00> : vector<2x128xf32>
    %167 = tpu.matmul %161, %12, %cst_91 {dimension_numbers = #tpu.dot_dimension_numbers<[1], [0], [0], [1], [0, 0, 1, 1], [], []>} : vector<2x32xbf16>, vector<32x128xbf16>, vector<2x128xf32> -> vector<2x128xf32>
    %168 = arith.addf %166, %167 : vector<2x128xf32>
    %169 = arith.mulf %168, %139 : vector<2x128xf32>
    %170 = math.tanh %169 : vector<2x128xf32>
    %cst_92 = arith.constant 5.000000e-01 : f32
    %171 = vector.broadcast %cst_92 : f32 to vector<2x128xf32>
    %172 = arith.mulf %171, %170 : vector<2x128xf32>
    %cst_93 = arith.constant 5.000000e-01 : f32
    %173 = vector.broadcast %cst_93 : f32 to vector<2x128xf32>
    %174 = arith.addf %172, %173 : vector<2x128xf32>
    %175 = arith.select %136, %170, %174 : vector<2x128xi1>, vector<2x128xf32>
    %176 = vector.extract_strided_slice %175 {offsets = [0, 0], sizes = [2, 32], strides = [1, 1]} : vector<2x128xf32> to vector<2x32xf32>
    %177 = vector.extract_strided_slice %175 {offsets = [0, 32], sizes = [2, 32], strides = [1, 1]} : vector<2x128xf32> to vector<2x32xf32>
    %178 = vector.extract_strided_slice %175 {offsets = [0, 64], sizes = [2, 32], strides = [1, 1]} : vector<2x128xf32> to vector<2x32xf32>
    %179 = vector.extract_strided_slice %175 {offsets = [0, 96], sizes = [2, 32], strides = [1, 1]} : vector<2x128xf32> to vector<2x32xf32>
    %180 = arith.mulf %177, %158 : vector<2x32xf32>
    %181 = arith.mulf %176, %178 : vector<2x32xf32>
    %182 = arith.addf %180, %181 : vector<2x32xf32>
    %183 = math.tanh %182 : vector<2x32xf32>
    %184 = arith.mulf %179, %183 : vector<2x32xf32>
    %185 = arith.truncf %184 : vector<2x32xf32> to vector<2x32xbf16>
    %186 = vector.extract_strided_slice %184 {offsets = [0, 0], sizes = [1, 32], strides = [1, 1]} : vector<2x32xf32> to vector<1x32xf32>
    %c1_94 = arith.constant 1 : index
    %c0_95 = arith.constant 0 : index
    %187 = vector.load %arg5[%c1_94, %c0_95] : memref<16x32xf32, #tpu.memory_space<vmem>>, vector<1x32xf32>
    tpu.vector_store %arg5[%c1_94, %c0_95], %186 {strides = array<i32>} : memref<16x32xf32, #tpu.memory_space<vmem>>, vector<1x32xf32>,
    %188 = vector.extract_strided_slice %184 {offsets = [1, 0], sizes = [1, 32], strides = [1, 1]} : vector<2x32xf32> to vector<1x32xf32>
    %c9 = arith.constant 9 : index
    %c0_96 = arith.constant 0 : index
    %189 = vector.load %arg5[%c9, %c0_96] : memref<16x32xf32, #tpu.memory_space<vmem>>, vector<1x32xf32>
    tpu.vector_store %arg5[%c9, %c0_96], %188 {strides = array<i32>} : memref<16x32xf32, #tpu.memory_space<vmem>>, vector<1x32xf32>,
    %190 = vector.extract_strided_slice %130 {offsets = [2, 0], sizes = [2, 128], strides = [1, 1]} : vector<14x128xf32> to vector<2x128xf32>
    %cst_97 = arith.constant dense<0.000000e+00> : vector<2x128xf32>
    %191 = tpu.matmul %185, %12, %cst_97 {dimension_numbers = #tpu.dot_dimension_numbers<[1], [0], [0], [1], [0, 0, 1, 1], [], []>} : vector<2x32xbf16>, vector<32x128xbf16>, vector<2x128xf32> -> vector<2x128xf32>
    %192 = arith.addf %190, %191 : vector<2x128xf32>
    %193 = arith.mulf %192, %139 : vector<2x128xf32>
    %194 = math.tanh %193 : vector<2x128xf32>
    %cst_98 = arith.constant 5.000000e-01 : f32
    %195 = vector.broadcast %cst_98 : f32 to vector<2x128xf32>
    %196 = arith.mulf %195, %194 : vector<2x128xf32>
    %cst_99 = arith.constant 5.000000e-01 : f32
    %197 = vector.broadcast %cst_99 : f32 to vector<2x128xf32>
    %198 = arith.addf %196, %197 : vector<2x128xf32>
    %199 = arith.select %136, %194, %198 : vector<2x128xi1>, vector<2x128xf32>
    %200 = vector.extract_strided_slice %199 {offsets = [0, 0], sizes = [2, 32], strides = [1, 1]} : vector<2x128xf32> to vector<2x32xf32>
    %201 = vector.extract_strided_slice %199 {offsets = [0, 32], sizes = [2, 32], strides = [1, 1]} : vector<2x128xf32> to vector<2x32xf32>
    %202 = vector.extract_strided_slice %199 {offsets = [0, 64], sizes = [2, 32], strides = [1, 1]} : vector<2x128xf32> to vector<2x32xf32>
    %203 = vector.extract_strided_slice %199 {offsets = [0, 96], sizes = [2, 32], strides = [1, 1]} : vector<2x128xf32> to vector<2x32xf32>
    %204 = arith.mulf %201, %182 : vector<2x32xf32>
    %205 = arith.mulf %200, %202 : vector<2x32xf32>
    %206 = arith.addf %204, %205 : vector<2x32xf32>
    %207 = math.tanh %206 : vector<2x32xf32>
    %208 = arith.mulf %203, %207 : vector<2x32xf32>
    %209 = arith.truncf %208 : vector<2x32xf32> to vector<2x32xbf16>
    %210 = vector.extract_strided_slice %208 {offsets = [0, 0], sizes = [1, 32], strides = [1, 1]} : vector<2x32xf32> to vector<1x32xf32>
    %c2_100 = arith.constant 2 : index
    %c0_101 = arith.constant 0 : index
    %211 = vector.load %arg5[%c2_100, %c0_101] : memref<16x32xf32, #tpu.memory_space<vmem>>, vector<1x32xf32>
    tpu.vector_store %arg5[%c2_100, %c0_101], %210 {strides = array<i32>} : memref<16x32xf32, #tpu.memory_space<vmem>>, vector<1x32xf32>,
    %212 = vector.extract_strided_slice %208 {offsets = [1, 0], sizes = [1, 32], strides = [1, 1]} : vector<2x32xf32> to vector<1x32xf32>
    %c10 = arith.constant 10 : index
    %c0_102 = arith.constant 0 : index
    %213 = vector.load %arg5[%c10, %c0_102] : memref<16x32xf32, #tpu.memory_space<vmem>>, vector<1x32xf32>
    tpu.vector_store %arg5[%c10, %c0_102], %212 {strides = array<i32>} : memref<16x32xf32, #tpu.memory_space<vmem>>, vector<1x32xf32>,
    %214 = vector.extract_strided_slice %130 {offsets = [4, 0], sizes = [2, 128], strides = [1, 1]} : vector<14x128xf32> to vector<2x128xf32>
    %cst_103 = arith.constant dense<0.000000e+00> : vector<2x128xf32>
    %215 = tpu.matmul %209, %12, %cst_103 {dimension_numbers = #tpu.dot_dimension_numbers<[1], [0], [0], [1], [0, 0, 1, 1], [], []>} : vector<2x32xbf16>, vector<32x128xbf16>, vector<2x128xf32> -> vector<2x128xf32>
    %216 = arith.addf %214, %215 : vector<2x128xf32>
    %217 = arith.mulf %216, %139 : vector<2x128xf32>
    %218 = math.tanh %217 : vector<2x128xf32>
    %cst_104 = arith.constant 5.000000e-01 : f32
    %219 = vector.broadcast %cst_104 : f32 to vector<2x128xf32>
    %220 = arith.mulf %219, %218 : vector<2x128xf32>
    %cst_105 = arith.constant 5.000000e-01 : f32
    %221 = vector.broadcast %cst_105 : f32 to vector<2x128xf32>
    %222 = arith.addf %220, %221 : vector<2x128xf32>
    %223 = arith.select %136, %218, %222 : vector<2x128xi1>, vector<2x128xf32>
    %224 = vector.extract_strided_slice %223 {offsets = [0, 0], sizes = [2, 32], strides = [1, 1]} : vector<2x128xf32> to vector<2x32xf32>
    %225 = vector.extract_strided_slice %223 {offsets = [0, 32], sizes = [2, 32], strides = [1, 1]} : vector<2x128xf32> to vector<2x32xf32>
    %226 = vector.extract_strided_slice %223 {offsets = [0, 64], sizes = [2, 32], strides = [1, 1]} : vector<2x128xf32> to vector<2x32xf32>
    %227 = vector.extract_strided_slice %223 {offsets = [0, 96], sizes = [2, 32], strides = [1, 1]} : vector<2x128xf32> to vector<2x32xf32>
    %228 = arith.mulf %225, %206 : vector<2x32xf32>
    %229 = arith.mulf %224, %226 : vector<2x32xf32>
    %230 = arith.addf %228, %229 : vector<2x32xf32>
    %231 = math.tanh %230 : vector<2x32xf32>
    %232 = arith.mulf %227, %231 : vector<2x32xf32>
    %233 = arith.truncf %232 : vector<2x32xf32> to vector<2x32xbf16>
    %234 = vector.extract_strided_slice %232 {offsets = [0, 0], sizes = [1, 32], strides = [1, 1]} : vector<2x32xf32> to vector<1x32xf32>
    %c3_106 = arith.constant 3 : index
    %c0_107 = arith.constant 0 : index
    %235 = vector.load %arg5[%c3_106, %c0_107] : memref<16x32xf32, #tpu.memory_space<vmem>>, vector<1x32xf32>
    tpu.vector_store %arg5[%c3_106, %c0_107], %234 {strides = array<i32>} : memref<16x32xf32, #tpu.memory_space<vmem>>, vector<1x32xf32>,
    %236 = vector.extract_strided_slice %232 {offsets = [1, 0], sizes = [1, 32], strides = [1, 1]} : vector<2x32xf32> to vector<1x32xf32>
    %c11 = arith.constant 11 : index
    %c0_108 = arith.constant 0 : index
    %237 = vector.load %arg5[%c11, %c0_108] : memref<16x32xf32, #tpu.memory_space<vmem>>, vector<1x32xf32>
    tpu.vector_store %arg5[%c11, %c0_108], %236 {strides = array<i32>} : memref<16x32xf32, #tpu.memory_space<vmem>>, vector<1x32xf32>,
    %238 = vector.extract_strided_slice %130 {offsets = [6, 0], sizes = [2, 128], strides = [1, 1]} : vector<14x128xf32> to vector<2x128xf32>
    %cst_109 = arith.constant dense<0.000000e+00> : vector<2x128xf32>
    %239 = tpu.matmul %233, %12, %cst_109 {dimension_numbers = #tpu.dot_dimension_numbers<[1], [0], [0], [1], [0, 0, 1, 1], [], []>} : vector<2x32xbf16>, vector<32x128xbf16>, vector<2x128xf32> -> vector<2x128xf32>
    %240 = arith.addf %238, %239 : vector<2x128xf32>
    %241 = arith.mulf %240, %139 : vector<2x128xf32>
    %242 = math.tanh %241 : vector<2x128xf32>
    %cst_110 = arith.constant 5.000000e-01 : f32
    %243 = vector.broadcast %cst_110 : f32 to vector<2x128xf32>
    %244 = arith.mulf %243, %242 : vector<2x128xf32>
    %cst_111 = arith.constant 5.000000e-01 : f32
    %245 = vector.broadcast %cst_111 : f32 to vector<2x128xf32>
    %246 = arith.addf %244, %245 : vector<2x128xf32>
    %247 = arith.select %136, %242, %246 : vector<2x128xi1>, vector<2x128xf32>
    %248 = vector.extract_strided_slice %247 {offsets = [0, 0], sizes = [2, 32], strides = [1, 1]} : vector<2x128xf32> to vector<2x32xf32>
    %249 = vector.extract_strided_slice %247 {offsets = [0, 32], sizes = [2, 32], strides = [1, 1]} : vector<2x128xf32> to vector<2x32xf32>
    %250 = vector.extract_strided_slice %247 {offsets = [0, 64], sizes = [2, 32], strides = [1, 1]} : vector<2x128xf32> to vector<2x32xf32>
    %251 = vector.extract_strided_slice %247 {offsets = [0, 96], sizes = [2, 32], strides = [1, 1]} : vector<2x128xf32> to vector<2x32xf32>
    %252 = arith.mulf %249, %230 : vector<2x32xf32>
    %253 = arith.mulf %248, %250 : vector<2x32xf32>
    %254 = arith.addf %252, %253 : vector<2x32xf32>
    %255 = math.tanh %254 : vector<2x32xf32>
    %256 = arith.mulf %251, %255 : vector<2x32xf32>
    %257 = arith.truncf %256 : vector<2x32xf32> to vector<2x32xbf16>
    %258 = vector.extract_strided_slice %256 {offsets = [0, 0], sizes = [1, 32], strides = [1, 1]} : vector<2x32xf32> to vector<1x32xf32>
    %c4_112 = arith.constant 4 : index
    %c0_113 = arith.constant 0 : index
    %259 = vector.load %arg5[%c4_112, %c0_113] : memref<16x32xf32, #tpu.memory_space<vmem>>, vector<1x32xf32>
    tpu.vector_store %arg5[%c4_112, %c0_113], %258 {strides = array<i32>} : memref<16x32xf32, #tpu.memory_space<vmem>>, vector<1x32xf32>,
    %260 = vector.extract_strided_slice %256 {offsets = [1, 0], sizes = [1, 32], strides = [1, 1]} : vector<2x32xf32> to vector<1x32xf32>
    %c12 = arith.constant 12 : index
    %c0_114 = arith.constant 0 : index
    %261 = vector.load %arg5[%c12, %c0_114] : memref<16x32xf32, #tpu.memory_space<vmem>>, vector<1x32xf32>
    tpu.vector_store %arg5[%c12, %c0_114], %260 {strides = array<i32>} : memref<16x32xf32, #tpu.memory_space<vmem>>, vector<1x32xf32>,
    %262 = vector.extract_strided_slice %130 {offsets = [8, 0], sizes = [2, 128], strides = [1, 1]} : vector<14x128xf32> to vector<2x128xf32>
    %cst_115 = arith.constant dense<0.000000e+00> : vector<2x128xf32>
    %263 = tpu.matmul %257, %12, %cst_115 {dimension_numbers = #tpu.dot_dimension_numbers<[1], [0], [0], [1], [0, 0, 1, 1], [], []>} : vector<2x32xbf16>, vector<32x128xbf16>, vector<2x128xf32> -> vector<2x128xf32>
    %264 = arith.addf %262, %263 : vector<2x128xf32>
    %265 = arith.mulf %264, %139 : vector<2x128xf32>
    %266 = math.tanh %265 : vector<2x128xf32>
    %cst_116 = arith.constant 5.000000e-01 : f32
    %267 = vector.broadcast %cst_116 : f32 to vector<2x128xf32>
    %268 = arith.mulf %267, %266 : vector<2x128xf32>
    %cst_117 = arith.constant 5.000000e-01 : f32
    %269 = vector.broadcast %cst_117 : f32 to vector<2x128xf32>
    %270 = arith.addf %268, %269 : vector<2x128xf32>
    %271 = arith.select %136, %266, %270 : vector<2x128xi1>, vector<2x128xf32>
    %272 = vector.extract_strided_slice %271 {offsets = [0, 0], sizes = [2, 32], strides = [1, 1]} : vector<2x128xf32> to vector<2x32xf32>
    %273 = vector.extract_strided_slice %271 {offsets = [0, 32], sizes = [2, 32], strides = [1, 1]} : vector<2x128xf32> to vector<2x32xf32>
    %274 = vector.extract_strided_slice %271 {offsets = [0, 64], sizes = [2, 32], strides = [1, 1]} : vector<2x128xf32> to vector<2x32xf32>
    %275 = vector.extract_strided_slice %271 {offsets = [0, 96], sizes = [2, 32], strides = [1, 1]} : vector<2x128xf32> to vector<2x32xf32>
    %276 = arith.mulf %273, %254 : vector<2x32xf32>
    %277 = arith.mulf %272, %274 : vector<2x32xf32>
    %278 = arith.addf %276, %277 : vector<2x32xf32>
    %279 = math.tanh %278 : vector<2x32xf32>
    %280 = arith.mulf %275, %279 : vector<2x32xf32>
    %281 = arith.truncf %280 : vector<2x32xf32> to vector<2x32xbf16>
    %282 = vector.extract_strided_slice %280 {offsets = [0, 0], sizes = [1, 32], strides = [1, 1]} : vector<2x32xf32> to vector<1x32xf32>
    %c5_118 = arith.constant 5 : index
    %c0_119 = arith.constant 0 : index
    %283 = vector.load %arg5[%c5_118, %c0_119] : memref<16x32xf32, #tpu.memory_space<vmem>>, vector<1x32xf32>
    tpu.vector_store %arg5[%c5_118, %c0_119], %282 {strides = array<i32>} : memref<16x32xf32, #tpu.memory_space<vmem>>, vector<1x32xf32>,
    %284 = vector.extract_strided_slice %280 {offsets = [1, 0], sizes = [1, 32], strides = [1, 1]} : vector<2x32xf32> to vector<1x32xf32>
    %c13 = arith.constant 13 : index
    %c0_120 = arith.constant 0 : index
    %285 = vector.load %arg5[%c13, %c0_120] : memref<16x32xf32, #tpu.memory_space<vmem>>, vector<1x32xf32>
    tpu.vector_store %arg5[%c13, %c0_120], %284 {strides = array<i32>} : memref<16x32xf32, #tpu.memory_space<vmem>>, vector<1x32xf32>,
    %286 = vector.extract_strided_slice %130 {offsets = [10, 0], sizes = [2, 128], strides = [1, 1]} : vector<14x128xf32> to vector<2x128xf32>
    %cst_121 = arith.constant dense<0.000000e+00> : vector<2x128xf32>
    %287 = tpu.matmul %281, %12, %cst_121 {dimension_numbers = #tpu.dot_dimension_numbers<[1], [0], [0], [1], [0, 0, 1, 1], [], []>} : vector<2x32xbf16>, vector<32x128xbf16>, vector<2x128xf32> -> vector<2x128xf32>
    %288 = arith.addf %286, %287 : vector<2x128xf32>
    %289 = arith.mulf %288, %139 : vector<2x128xf32>
    %290 = math.tanh %289 : vector<2x128xf32>
    %cst_122 = arith.constant 5.000000e-01 : f32
    %291 = vector.broadcast %cst_122 : f32 to vector<2x128xf32>
    %292 = arith.mulf %291, %290 : vector<2x128xf32>
    %cst_123 = arith.constant 5.000000e-01 : f32
    %293 = vector.broadcast %cst_123 : f32 to vector<2x128xf32>
    %294 = arith.addf %292, %293 : vector<2x128xf32>
    %295 = arith.select %136, %290, %294 : vector<2x128xi1>, vector<2x128xf32>
    %296 = vector.extract_strided_slice %295 {offsets = [0, 0], sizes = [2, 32], strides = [1, 1]} : vector<2x128xf32> to vector<2x32xf32>
    %297 = vector.extract_strided_slice %295 {offsets = [0, 32], sizes = [2, 32], strides = [1, 1]} : vector<2x128xf32> to vector<2x32xf32>
    %298 = vector.extract_strided_slice %295 {offsets = [0, 64], sizes = [2, 32], strides = [1, 1]} : vector<2x128xf32> to vector<2x32xf32>
    %299 = vector.extract_strided_slice %295 {offsets = [0, 96], sizes = [2, 32], strides = [1, 1]} : vector<2x128xf32> to vector<2x32xf32>
    %300 = arith.mulf %297, %278 : vector<2x32xf32>
    %301 = arith.mulf %296, %298 : vector<2x32xf32>
    %302 = arith.addf %300, %301 : vector<2x32xf32>
    %303 = math.tanh %302 : vector<2x32xf32>
    %304 = arith.mulf %299, %303 : vector<2x32xf32>
    %305 = arith.truncf %304 : vector<2x32xf32> to vector<2x32xbf16>
    %306 = vector.extract_strided_slice %304 {offsets = [0, 0], sizes = [1, 32], strides = [1, 1]} : vector<2x32xf32> to vector<1x32xf32>
    %c6_124 = arith.constant 6 : index
    %c0_125 = arith.constant 0 : index
    %307 = vector.load %arg5[%c6_124, %c0_125] : memref<16x32xf32, #tpu.memory_space<vmem>>, vector<1x32xf32>
    tpu.vector_store %arg5[%c6_124, %c0_125], %306 {strides = array<i32>} : memref<16x32xf32, #tpu.memory_space<vmem>>, vector<1x32xf32>,
    %308 = vector.extract_strided_slice %304 {offsets = [1, 0], sizes = [1, 32], strides = [1, 1]} : vector<2x32xf32> to vector<1x32xf32>
    %c14 = arith.constant 14 : index
    %c0_126 = arith.constant 0 : index
    %309 = vector.load %arg5[%c14, %c0_126] : memref<16x32xf32, #tpu.memory_space<vmem>>, vector<1x32xf32>
    tpu.vector_store %arg5[%c14, %c0_126], %308 {strides = array<i32>} : memref<16x32xf32, #tpu.memory_space<vmem>>, vector<1x32xf32>,
    %310 = vector.extract_strided_slice %130 {offsets = [12, 0], sizes = [2, 128], strides = [1, 1]} : vector<14x128xf32> to vector<2x128xf32>
    %cst_127 = arith.constant dense<0.000000e+00> : vector<2x128xf32>
    %311 = tpu.matmul %305, %12, %cst_127 {dimension_numbers = #tpu.dot_dimension_numbers<[1], [0], [0], [1], [0, 0, 1, 1], [], []>} : vector<2x32xbf16>, vector<32x128xbf16>, vector<2x128xf32> -> vector<2x128xf32>
    %312 = arith.addf %310, %311 : vector<2x128xf32>
    %313 = arith.mulf %312, %139 : vector<2x128xf32>
    %314 = math.tanh %313 : vector<2x128xf32>
    %cst_128 = arith.constant 5.000000e-01 : f32
    %315 = vector.broadcast %cst_128 : f32 to vector<2x128xf32>
    %316 = arith.mulf %315, %314 : vector<2x128xf32>
    %cst_129 = arith.constant 5.000000e-01 : f32
    %317 = vector.broadcast %cst_129 : f32 to vector<2x128xf32>
    %318 = arith.addf %316, %317 : vector<2x128xf32>
    %319 = arith.select %136, %314, %318 : vector<2x128xi1>, vector<2x128xf32>
    %320 = vector.extract_strided_slice %319 {offsets = [0, 0], sizes = [2, 32], strides = [1, 1]} : vector<2x128xf32> to vector<2x32xf32>
    %321 = vector.extract_strided_slice %319 {offsets = [0, 32], sizes = [2, 32], strides = [1, 1]} : vector<2x128xf32> to vector<2x32xf32>
    %322 = vector.extract_strided_slice %319 {offsets = [0, 64], sizes = [2, 32], strides = [1, 1]} : vector<2x128xf32> to vector<2x32xf32>
    %323 = vector.extract_strided_slice %319 {offsets = [0, 96], sizes = [2, 32], strides = [1, 1]} : vector<2x128xf32> to vector<2x32xf32>
    %324 = arith.mulf %321, %302 : vector<2x32xf32>
    %325 = arith.mulf %320, %322 : vector<2x32xf32>
    %326 = arith.addf %324, %325 : vector<2x32xf32>
    %327 = math.tanh %326 : vector<2x32xf32>
    %328 = arith.mulf %323, %327 : vector<2x32xf32>
    %329 = vector.extract_strided_slice %328 {offsets = [0, 0], sizes = [1, 32], strides = [1, 1]} : vector<2x32xf32> to vector<1x32xf32>
    %c7 = arith.constant 7 : index
    %c0_130 = arith.constant 0 : index
    %330 = vector.load %arg5[%c7, %c0_130] : memref<16x32xf32, #tpu.memory_space<vmem>>, vector<1x32xf32>
    tpu.vector_store %arg5[%c7, %c0_130], %329 {strides = array<i32>} : memref<16x32xf32, #tpu.memory_space<vmem>>, vector<1x32xf32>,
    %331 = vector.extract_strided_slice %328 {offsets = [1, 0], sizes = [1, 32], strides = [1, 1]} : vector<2x32xf32> to vector<1x32xf32>
    %c15 = arith.constant 15 : index
    %c0_131 = arith.constant 0 : index
    %332 = vector.load %arg5[%c15, %c0_131] : memref<16x32xf32, #tpu.memory_space<vmem>>, vector<1x32xf32>
    tpu.vector_store %arg5[%c15, %c0_131], %331 {strides = array<i32>} : memref<16x32xf32, #tpu.memory_space<vmem>>, vector<1x32xf32>,
    %c0_132 = arith.constant 0 : index
    %c0_133 = arith.constant 0 : index
    %333 = vector.load %arg5[%c0_132, %c0_133] : memref<16x32xf32, #tpu.memory_space<vmem>>, vector<16x32xf32>
    %334 = arith.truncf %333 : vector<16x32xf32> to vector<16x32xbf16>
    %cst_134 = arith.constant dense<0.000000e+00> : vector<16x64xf32>
    %335 = tpu.matmul %334, %14, %cst_134 {dimension_numbers = #tpu.dot_dimension_numbers<[1], [0], [0], [1], [0, 0, 1, 1], [], []>} : vector<16x32xbf16>, vector<32x64xbf16>, vector<16x64xf32> -> vector<16x64xf32>
    %336 = vector.broadcast %4 : vector<1x64xf32> to vector<16x64xf32>
    %337 = arith.addf %335, %336 : vector<16x64xf32>
    %338 = vector.shape_cast %337 : vector<16x64xf32> to vector<2x8x64xf32>
    %c0_135 = arith.constant 0 : index
    %c0_136 = arith.constant 0 : index
    %c0_137 = arith.constant 0 : index
    %339 = vector.load %arg4[%c0_135, %c0_136, %c0_137] : memref<2x8x64xf32, #tpu.memory_space<vmem>>, vector<2x8x64xf32>
    tpu.vector_store %arg4[%c0_135, %c0_136, %c0_137], %338 {strides = array<i32>} : memref<2x8x64xf32, #tpu.memory_space<vmem>>, vector<2x8x64xf32>,
    return
  }
  func.func @transform_0(%arg0: i32, %arg1: memref<2x8xi32, #tpu.memory_space<smem>>) -> (i32, i32) {
    %c0_i32 = arith.constant 0 : i32
    %c0_i32_0 = arith.constant 0 : i32
    %c0_i32_1 = arith.constant 0 : i32
    return %c0_i32, %c0_i32_0 : i32, i32
  }
  func.func @transform_1(%arg0: i32, %arg1: memref<2x8xi32, #tpu.memory_space<smem>>) -> (i32, i32) {
    %c0_i32 = arith.constant 0 : i32
    %c0_i32_0 = arith.constant 0 : i32
    %c0_i32_1 = arith.constant 0 : i32
    return %c0_i32, %c0_i32_0 : i32, i32
  }
  func.func @transform_2(%arg0: i32, %arg1: memref<2x8xi32, #tpu.memory_space<smem>>) -> (i32, i32, i32) {
    %c0_i32 = arith.constant 0 : i32
    %c0_i32_0 = arith.constant 0 : i32
    %c0_i32_1 = arith.constant 0 : i32
    %c0_i32_2 = arith.constant 0 : i32
    return %c0_i32, %c0_i32_0, %c0_i32_1 : i32, i32, i32
  }
}

</mosaic_0001>

<bundles_post_ra>
// kernel: image_captions_net_forward.1
= control target key start
LH: loop header
LB: loop body
LE: loop exit
PB: predicated region body
PF: predicated region fallthrough
CT: control target
= control target key end

     0   :  { %s2539_s0 = inlined_call_operand.vmem [shape: s32[2,8], index: 0, kind: input, shape index: {}]   ;;  %s2540_s1 = inlined_call_operand.vmem [shape: f32[8,256], index: 1, kind: input, shape index: {}]   ;;  %s2541_s2 = inlined_call_operand.hbm [shape: f32[296,128], index: 2, kind: input, shape index: {}]   ;;  %s2542_s3 = inlined_call_operand.hbm [shape: f32[2,8,64], index: 3, kind: output, shape index: {}]  }
   0x1   :  { %s8_s14 = sshll.u32 %s2539_s0, 4  ;;  %s9_s14 = int_to_ptr.vmem [resolvable:$true] %s8_s14 }
   0x2   :  { %s2094_s15 = scalar_lea.vmem %s9_s14, 32  ;;  %p2099_p1 = scmp.lt.s32.totalorder %s9_s14, %s9_s14 }
   0x3   :  { %p2095_p0 = scmp.ne.s32.totalorder %s9_s14, %s2094_s15  ;;  %p2100_p2 = scmp.lt.s32.totalorder %s2094_s15, %s2094_s15 }
   0x5   :  { %p2101_p3 = por %p2100_p2, %p2099_p1 }
   0x7   :  { %p2102_p4 = pnand %p2101_p3, %p2095_p0 }
   0x9   :  { %2105 = shalt.err (!%p2102_p4)  }
   0xa   :  { %s2156_s16 = smov [#allocation4]  }
   0xb   :  { %11 = dma.vmem_to_smem %s9_s14, 32, %s2156_s16, [#allocation3] }
   0xc   :  { %2150 = dma.done.wait [#allocation3], 32 }
   0xd   :  { %2151 = vsyncadd [#allocation3], 4294967264 }
   0xe   :  { %13 = sfence }
   0xf   :  { %14 = vsyncpa [#allocation6], 0 }
  0x10   :  { %15 = vsyncpa [#allocation7], 0  ;;  %s2157_s17 = smov [#allocation5]   ;;  %s2106_s20 = scalar_lea.hbm %s2541_s2, 4736 }
  0x11   :  { %s23_s18 = sshll.u32 %s2157_s17, 4  ;;  %p2107_p5 = scmp.ne.s32.totalorder %s2541_s2, %s2106_s20  ;;  %s24_s18 = int_to_ptr.vmem [resolvable:$true] %s23_s18 }
  0x12   :  { %p2110_p6 = scmp.lt.u32.totalorder %s2106_s20, %s2541_s2 }
  0x14   :  { %p2112_p7 = pnand %p2110_p6, %p2107_p5 }
  0x16   :  { %2115 = shalt.err (!%p2112_p7)
}
  0x17   :  { %s2116_s25 = scalar_lea.vmem %s24_s18, 4736  ;;  %p2121_p9 = scmp.lt.s32.totalorder %s24_s18, %s24_s18 }
  0x18   :  { %p2117_p8 = scmp.ne.s32.totalorder %s24_s18, %s2116_s25  ;;  %p2122_p10 = scmp.lt.s32.totalorder %s2116_s25, %s2116_s25 }
  0x1a   :  { %p2123_p11 = por %p2122_p10, %p2121_p9 }
  0x1c   :  { %p2124_p12 = pnand %p2123_p11, %p2117_p8 }
  0x1e   :  { %2127 = shalt.err (!%p2124_p12)
}
  0x1f   :  { %s2158_s26 = smov 128   ;;  %s2159_s27 = smov 8  }
  0x20   :  { %29 = dma.hbm_to_vmem [thread:$0]  %s2541_s2, 4736, %s24_s18, [#allocation6], %s2158_s26, %s2158_s26, %s2159_s27  }
  0x21   :  { %2152 = dma.done.wait [#allocation6], 4736  }
  0x22   :  { %2153 = vsyncadd [#allocation6], 4294962560  ;;  %v2160_v0 = vmov 0   ;;  %v82_v1 = vld [vmem:[%s2540_s1 + $0x8] sm:$0xf]  ;;  %vm108_vm0 = vcmask 1041408  }
  0x23   :  { %153 = vmatprep.mubr.bf16.mxu0 %v2160_v0  ;;  %226 = vmatprep.mubr.bf16.mxu1 %v2160_v0  ;;  %v81_v2 = vld [vmem:[%s2540_s1] sm:$0xf]  ;;  %v92_v3 = vpack.c.bf16 %v82_v1, %v82_v1  ;;  %v84_v6 = vld [vmem:[%s2540_s1 + $0x8] sm:$0xf0]  ;;  %v83_v7 = vld [vmem:[%s2540_s1] sm:$0xf0] }
  0x24   :  { %v91_v4 = vpack.c.bf16 %v81_v2, %v81_v2  ;;  %v39_v8 = vld [vmem:[#allocation5 + $0x8] sm:$0xff]  ;;  %v88_v9 = vrot.slane %v84_v6, 4  ;;  %v87_v10 = vrot.slane %v83_v7, 4  ;;  %v40_v11 = vld [vmem:[#allocation5 + $0x10] sm:$0xff]  ;;  %vm95_vm1 = vcmask 31744   ;;  %v41_v16 = vld [vmem:[#allocation5 + $0x18] sm:$0xff] }
  0x25   :  { %1608 = vmatprep.subr.msk.bf16.mxu0 %vm108_vm0, %v92_v3  ;;  %v47_v12 = vpack.c.bf16 %v40_v11, %v39_v8  ;;  %v42_v17 = vld [vmem:[#allocation5 + $0x20] sm:$0xff]  ;;  %v43_v19 = vld [vmem:[#allocation5 + $0x28] sm:$0xff]  ;;  %v44_v20 = vld [vmem:[#allocation5 + $0x30] sm:$0xff]  ;;  %s1631_s1 = sld [smem:[#allocation4 + $0x80]]  ;;  %s1633_s10 = sld [smem:[#allocation4 + $0x1]] }
  0x26   :  { %v110_v5 = vsel %vm108_vm0, %v91_v4, 0  ;;  %v94_v13 = vpack.c.bf16 %v88_v9, %v88_v9  ;;  %v93_v14 = vpack.c.bf16 %v87_v10, %v87_v10  ;;  %v48_v18 = vpack.c.bf16 %v42_v17, %v41_v16  ;;  %v45_v22 = vld [vmem:[#allocation5 + $0x38] sm:$0xff]  ;;  %v46_v23 = vld [vmem:[#allocation5 + $0x40] sm:$0xff]  ;;  %s653_s11 = sld [smem:[#allocation4]]  ;;  %s1635_s12 = sld [smem:[#allocation4 + $0x81]] }
  0x27   :  { %122 = vmatpush1.bf16.msra.mxu0 %v110_v5  ;;  %v49_v21 = vpack.c.bf16 %v44_v20, %v43_v19  ;;  %v50_v24 = vpack.c.bf16 %v46_v23, %v45_v22  ;;  %s1647_s13 = sld [smem:[#allocation4 + $0x84]]  ;;  %s2303_s14 = sld [smem:[#allocation4 + $0x5]] }
  0x28   :  { %1613 = vmatprep.subr.msk.bf16.mxu1 %vm108_vm0, %v94_v13  ;;  %v116_v15 = vsel %vm108_vm0, %v93_v14, 0  ;;  %s2305_s15 = sld [smem:[#allocation4 + $0x4]]  ;;  %s2307_s16 = sld [smem:[#allocation4 + $0x2]] }
  0x29   :  { %195 = vmatpush1.bf16.msra.mxu1 %v116_v15  ;;  %s2309_s18 = sld [smem:[#allocation4 + $0x82]]  ;;  %s2311_s19 = sld [smem:[#allocation4 + $0x85]] }
  0x2a   :  { %1609 = vmatmul.mubr.msk.bf16.vlgmr.msra.gmra.mrb[0].mxu0 %vm95_vm1, %v47_v12  ;;  %s2313_s20 = sld [smem:[#allocation4 + $0x3]]  ;;  %s2315_s22 = sld [smem:[#allocation4 + $0x6]] }
  0x2b   :  { %163 = vmatprep.mubr.bf16.mxu0 %v2160_v0  ;;  %s1582_s17 = scalar_lea.vmem [#allocation5], %s1631_s1  ;;  %s1584_s0 = scalar_lea.vmem [#allocation5], %s1633_s10 }
  0x2c   :  { %1614 = vmatmul.mubr.msk.bf16.vlgmr.msra.gmra.mrb[0].mxu1 %vm95_vm1, %v47_v12  ;;  %s1580_s21 = scalar_lea.vmem [#allocation5], %s653_s11  ;;  %s1586_s23 = scalar_lea.vmem [#allocation5], %s1635_s12 }
  0x2d   :  { %236 = vmatprep.mubr.bf16.mxu1 %v2160_v0  ;;  %s1598_s24 = scalar_lea.vmem [#allocation5], %s1647_s13  ;;  %s2318_s25 = sld [smem:[#allocation4 + $0x83]] }
  0x2e   :  { %s2320_s28 = sld [smem:[#allocation4 + $0x86]]  ;;  %s1600_s29 = scalar_lea.vmem [#allocation5], %s2303_s14 }
  0x2f   :  { %s1588_s30 = scalar_lea.vmem [#allocation5], %s2307_s16  ;;  %s1596_s4 = scalar_lea.vmem [#allocation5], %s2305_s15 }
  0x30   :  { %s1590_s5 = scalar_lea.vmem [#allocation5], %s2309_s18  ;;  %s1602_s6 = scalar_lea.vmem [#allocation5], %s2311_s19 }
  0x31   :  { %s1592_s2 = scalar_lea.vmem [#allocation5], %s2313_s20  ;;  %s1604_s7 = scalar_lea.vmem [#allocation5], %s2315_s22 }
  0x32   :  { %1610 = vmatmul.mubr.msk.bf16.gmra.mrb[4].mxu0 %vm95_vm1, %v48_v18  ;;  %s2165_s1 = smov 64   ;;  %s2166_s10 = smov 32  }
  0x33   :  { %173 = vmatprep.mubr.bf16.mxu0 %v2160_v0  ;;  %s1594_s8 = scalar_lea.vmem [#allocation5], %s2318_s25  ;;  %s2167_s11 = smov [#allocation8]  }
  0x34   :  { %1615 = vmatmul.mubr.msk.bf16.gmra.mrb[4].mxu1 %vm95_vm1, %v48_v18  ;;  %s1606_s9 = scalar_lea.vmem [#allocation5], %s2320_s28  ;;  %s1568_s12 = sshll.u32 %s2167_s11, 4  ;;  %s1569_s12 = int_to_ptr.vmem [resolvable:$true] %s1568_s12 }
  0x35   :  { %246 = vmatprep.mubr.bf16.mxu1 %v2160_v0  ;;  %s2128_s13 = scalar_lea.vmem %s1569_s12, 256  ;;  %p2133_p0 = scmp.lt.s32.totalorder %s1569_s12, %s1569_s12 }
  0x36   :  { %p2129_p13 = scmp.ne.s32.totalorder %s1569_s12, %s2128_s13  ;;  %p2134_p1 = scmp.lt.s32.totalorder %s2128_s13, %s2128_s13 }
  0x38   :  { %p2135_p2 = por %p2134_p1, %p2133_p0 }
  0x3a   :  { %1611 = vmatmul.mubr.msk.bf16.gmra.mrb[8].mxu0 %vm95_vm1, %v49_v21  ;;  %p2136_p3 = pnand %p2135_p2, %p2129_p13 }
  0x3b   :  { %183 = vmatprep.mubr.bf16.mxu0 %v2160_v0 }
  0x3c   :  { %1616 = vmatmul.mubr.msk.bf16.gmra.mrb[8].mxu1 %vm95_vm1, %v49_v21 }
  0x3d   :  { %256 = vmatprep.mubr.bf16.mxu1 %v2160_v0 }
  0x42   :  { %1612 = vmatmul.mubr.msk.bf16.gmra.mrb[12].mxu0 %vm95_vm1, %v50_v24 }
  0x44   :  { %1617 = vmatmul.mubr.msk.bf16.gmra.mrb[12].mxu1 %vm95_vm1, %v50_v24 }
  0xfd   :  { %v155_v25 = vpop.f32.mrb[0].mxu0 }
  0xfe   :  { %v157_v26 = vpop.f32.mrb[1].mxu0  ;;  %v267_v29 = vmax.f32 %v155_v25, 0.0 }
  0xff   :  { %v159_v27 = vpop.f32.mrb[2].mxu0  ;;  %v268_v30 = vmax.f32 %v157_v26, 0.0  ;;  %v228_v31 = vpop.f32.mrb[0].mxu1 }
 0x100   :  { %v161_v28 = vpop.f32.mrb[3].mxu0  ;;  %v269_v32 = vmax.f32 %v228_v31, 0.0  ;;  %v230_v33 = vpop.f32.mrb[1].mxu1  ;;  %v271_v36 = vmax.f32 %v159_v27, 0.0 }
 0x101   :  { %v270_v34 = vmax.f32 %v230_v33, 0.0  ;;  %v232_v35 = vpop.f32.mrb[2].mxu1  ;;  %v272_v41 = vmax.f32 %v161_v28, 0.0 }
 0x102   :  { %v273_v37 = vmax.f32 %v232_v35, 0.0  ;;  %v234_v38 = vpop.f32.mrb[3].mxu1  ;;  %v1964_v39 = vpack.i.bf16 %v269_v32, %v267_v29 }
 0x103   :  { %v274_v42 = vmax.f32 %v234_v38, 0.0  ;;  %v1868_v43 = vpack.i.bf16 %v270_v34, %v268_v30 }
 0x104   :  { %1965 = vxpose.xlu1.b32.start [1/8] (short) %v1964_v39, 128  ;;  %v1966_v46 = vpack.i.bf16 %v273_v37, %v271_v36 }
 0x105   :  { %v165_v40 = vpop.f32.mrb[4].mxu0  ;;  %1869 = vxpose.xlu0.b32.start [1/8] (short) %v1868_v43, 128  ;;  %v1870_v48 = vpack.i.bf16 %v274_v42, %v272_v41  ;;  %v427_v42 = vlaneseq }
 0x106   :  { %v167_v44 = vpop.f32.mrb[5].mxu0  ;;  %v275_v49 = vmax.f32 %v165_v40, 0.0 }
 0x107   :  { %v169_v45 = vpop.f32.mrb[6].mxu0  ;;  %v276_v50 = vmax.f32 %v167_v44, 0.0  ;;  %v238_v51 = vpop.f32.mrb[4].mxu1  ;;  %v428_v43 = vshrl.u32 %v427_v42, 7  ;;  %v2238_v44 = vand.u32 127, %v427_v42 }
 0x108   :  { %v171_v47 = vpop.f32.mrb[7].mxu0  ;;  %v277_v52 = vmax.f32 %v238_v51, 0.0  ;;  %v240_v53 = vpop.f32.mrb[5].mxu1  ;;  %1967 = vxpose.xlu1.b32.cont [2/8] (short) %v1966_v46, 128  ;;  %v279_v56 = vmax.f32 %v169_v45, 0.0 }
 0x109   :  { %v278_v54 = vmax.f32 %v240_v53, 0.0  ;;  %v242_v55 = vpop.f32.mrb[6].mxu1  ;;  %1871 = vxpose.xlu0.b32.cont [2/8] (short) %v1870_v48, 128  ;;  %v280_v61 = vmax.f32 %v171_v47, 0.0  ;;  %v431_v45 = vadd.s32 128, %v2238_v44  ;;  %v434_v46 = vmul.u32 256, %v428_v43 }
 0x10a   :  { %v281_v57 = vmax.f32 %v242_v55, 0.0  ;;  %v244_v58 = vpop.f32.mrb[7].mxu1  ;;  %v1968_v59 = vpack.i.bf16 %v277_v52, %v275_v49  ;;  %v433_v47 = vadd.s32 384, %v2238_v44  ;;  %v432_v48 = vadd.s32 256, %v2238_v44 }
 0x10b   :  { %v282_v62 = vmax.f32 %v244_v58, 0.0  ;;  %v1872_v63 = vpack.i.bf16 %v278_v54, %v276_v50  ;;  %v436_v49 = vsub.s32 %v431_v45, %v434_v46  ;;  %v2244_v51 = vsub.s32 %v2238_v44, %v434_v46 }
 0x10c   :  { %1969 = vxpose.xlu1.b32.cont [3/8] (short) %v1968_v59, 128  ;;  %v1970_v3 = vpack.i.bf16 %v281_v57, %v279_v56  ;;  %v438_v50 = vsub.s32 %v433_v47, %v434_v46  ;;  %v2246_v52 = vsub.s32 %v432_v48, %v434_v46  ;;  %v2161_v53 = vmov 0.00390625|0.00390625  }
 0x10d   :  { %v175_v60 = vpop.f32.mrb[8].mxu0  ;;  %1873 = vxpose.xlu0.b32.cont [3/8] (short) %v1872_v63, 128  ;;  %v1874_v5 = vpack.i.bf16 %v282_v62, %v280_v61  ;;  %vm440_vm2 = vcmp.ge.s32.totalorder %v436_v49, 0  ;;  %vm444_vm3 = vcmp.lt.s32.totalorder %v436_v49, 256  ;;  %vm439_vm10 = vcmp.ge.s32.totalorder %v2244_v51, 0 }
 0x10e   :  { %v177_v1 = vpop.f32.mrb[9].mxu0  ;;  %v283_v6 = vmax.f32 %v175_v60, 0.0  ;;  %vm448_vm4 = vmand %vm440_vm2, %vm444_vm3  ;;  %vm442_vm5 = vcmp.ge.s32.totalorder %v438_v50, 0  ;;  %vm446_vm6 = vcmp.lt.s32.totalorder %v438_v50, 256  ;;  %vm443_vm11 = vcmp.lt.s32.totalorder %v2244_v51, 256 }
 0x10f   :  { %v179_v2 = vpop.f32.mrb[10].mxu0  ;;  %v284_v7 = vmax.f32 %v177_v1, 0.0  ;;  %v248_v8 = vpop.f32.mrb[8].mxu1  ;;  %vm1618_vm7 = vmpackc.low %vm448_vm4, %vm448_vm4  ;;  %vm441_vm12 = vcmp.ge.s32.totalorder %v2246_v52, 0  ;;  %vm445_vm13 = vcmp.lt.s32.totalorder %v2246_v52, 256  ;;  %vm2163_vm3 = vmmov 0  }
 0x110   :  { %v181_v4 = vpop.f32.mrb[11].mxu0  ;;  %v285_v9 = vmax.f32 %v248_v8, 0.0  ;;  %v250_v10 = vpop.f32.mrb[9].mxu1  ;;  %1971 = vxpose.xlu1.b32.cont [4/8] (short) %v1970_v3, 128  ;;  %v287_v13 = vmax.f32 %v179_v2, 0.0  ;;  %1619 = vmatprep.mubr.msk.bf16.mxu0 %vm1618_vm7, %v2161_v53  ;;  %vm450_vm8 = vmand %vm442_vm5, %vm446_vm6  ;;  %vm576_vm4 = vcmask 523264   ;;  %vm620_vm5 = vcmask 254976  }
 0x111   :  { %v286_v11 = vmax.f32 %v250_v10, 0.0  ;;  %v252_v12 = vpop.f32.mrb[10].mxu1  ;;  %1875 = vxpose.xlu0.b32.cont [4/8] (short) %v1874_v5, 128  ;;  %v288_v18 = vmax.f32 %v181_v4, 0.0  ;;  %vm1622_vm9 = vmpackc.low %vm450_vm8, %vm450_vm8  ;;  %vm745_vm6 = vcmask 1040384   ;;  %vm748_vm7 = vcmask 1042432  }
 0x112   :  { %v289_v14 = vmax.f32 %v252_v12, 0.0  ;;  %v254_v15 = vpop.f32.mrb[11].mxu1  ;;  %v1972_v16 = vpack.i.bf16 %v285_v9, %v283_v6  ;;  %1623 = vmatprep.mubr.msk.bf16.mxu1 %vm1622_vm9, %v2161_v53  ;;  %vm2254_vm14 = vmand %vm439_vm10, %vm443_vm11  ;;  %vm750_vm8 = vcmask 1043456   ;;  %vm752_vm9 = vcmask 1044480  }
 0x113   :  { %v290_v19 = vmax.f32 %v254_v15, 0.0  ;;  %v1876_v20 = vpack.i.bf16 %v286_v11, %v284_v7  ;;  %vm2258_vm15 = vmand %vm441_vm12, %vm445_vm13  ;;  %vm754_vm10 = vcmask 1045504   ;;  %vm756_vm11 = vcmask 1046528  }
 0x114   :  { %1973 = vxpose.xlu1.b32.cont [5/8] (short) %v1972_v16, 128  ;;  %v1974_v23 = vpack.i.bf16 %v289_v14, %v287_v13  ;;  %vm1620_vm1 = vmpackc.low %vm2254_vm14, %vm2254_vm14  ;;  %vm857_vm12 = vcmp.ge.s32.totalorder %v2238_v44, 64  ;;  %vm858_vm13 = vcmp.lt.s32.totalorder %v2238_v44, 96 }
 0x115   :  { %v185_v17 = vpop.f32.mrb[12].mxu0  ;;  %1877 = vxpose.xlu0.b32.cont [5/8] (short) %v1876_v20, 128  ;;  %v1878_v25 = vpack.i.bf16 %v290_v19, %v288_v18  ;;  %vm1624_vm2 = vmpackc.low %vm2258_vm15, %vm2258_vm15  ;;  %vm932_vm15 = vcmask 253952  }
 0x116   :  { %v187_v21 = vpop.f32.mrb[13].mxu0  ;;  %v291_v26 = vmax.f32 %v185_v17, 0.0  ;;  %vm2368_vm14 = vmand %vm857_vm12, %vm858_vm13 }
 0x117   :  { %v189_v22 = vpop.f32.mrb[14].mxu0  ;;  %v292_v27 = vmax.f32 %v187_v21, 0.0  ;;  %v258_v28 = vpop.f32.mrb[12].mxu1 }
 0x118   :  { %v191_v24 = vpop.f32.mrb[15].mxu0  ;;  %v293_v29 = vmax.f32 %v258_v28, 0.0  ;;  %v260_v30 = vpop.f32.mrb[13].mxu1  ;;  %1975 = vxpose.xlu1.b32.cont [6/8] (short) %v1974_v23, 128  ;;  %v295_v33 = vmax.f32 %v189_v22, 0.0 }
 0x119   :  { %v294_v31 = vmax.f32 %v260_v30, 0.0  ;;  %v262_v32 = vpop.f32.mrb[14].mxu1  ;;  %1879 = vxpose.xlu0.b32.cont [6/8] (short) %v1878_v25, 128  ;;  %v296_v37 = vmax.f32 %v191_v24, 0.0 }
 0x11a   :  { %v297_v34 = vmax.f32 %v262_v32, 0.0  ;;  %v264_v35 = vpop.f32.mrb[15].mxu1  ;;  %v1976_v36 = vpack.i.bf16 %v293_v29, %v291_v26 }
 0x11b   :  { %v298_v38 = vmax.f32 %v264_v35, 0.0  ;;  %v1880_v39 = vpack.i.bf16 %v294_v31, %v292_v27 }
 0x11c   :  { %1977 = vxpose.xlu1.b32.cont [7/8] (short) %v1976_v36, 128  ;;  %v1978_v40 = vpack.i.bf16 %v297_v34, %v295_v33 }
 0x11d   :  { %1881 = vxpose.xlu0.b32.cont [7/8] (short) %v1880_v39, 128  ;;  %v1882_v41 = vpack.i.bf16 %v298_v38, %v296_v37 }
 0x120   :  { %1979 = vxpose.xlu1.b32.end [8/8] (short) %v1978_v40, 128 }
 0x121   :  { %1883 = vxpose.xlu0.b32.end [8/8] (short) %v1882_v41, 128 }
 0x184   :  { %v1980_v54 = vpop.trf.xlu1 }
 0x185   :  { %v1884_v55 = vpop.trf.xlu0  ;;  %v1984_v1 = vunpack.i.h.bf16 %v1980_v54  ;;  %v1981_v2 = vunpack.i.l.bf16 %v1980_v54 }
 0x186   :  { %v1888_v56 = vunpack.i.h.bf16 %v1884_v55  ;;  %v1885_v57 = vunpack.i.l.bf16 %v1884_v55 }
 0x188   :  { %v1985_v58 = vpop.trf.xlu1 }
 0x189   :  { %v1989_v59 = vunpack.i.h.bf16 %v1985_v58  ;;  %v1986_v60 = vunpack.i.l.bf16 %v1985_v58  ;;  %v1889_v61 = vpop.trf.xlu0 }
 0x18a   :  { %v1893_v62 = vunpack.i.h.bf16 %v1889_v61  ;;  %v1890_v63 = vunpack.i.l.bf16 %v1889_v61 }
 0x18b   :  { %v459_v7 = vpack.c.bf16 %v1986_v60, %v1981_v2  ;;  %v475_v8 = vpack.c.bf16 %v1989_v59, %v1984_v1 }
 0x18c   :  { %v1990_v3 = vpop.trf.xlu1  ;;  %v467_v4 = vpack.c.bf16 %v1890_v63, %v1885_v57  ;;  %v483_v5 = vpack.c.bf16 %v1893_v62, %v1888_v56 }
 0x18d   :  { %v1894_v6 = vpop.trf.xlu0  ;;  %v1994_v17 = vunpack.i.h.bf16 %v1990_v3  ;;  %v1991_v18 = vunpack.i.l.bf16 %v1990_v3 }
 0x18e   :  { %1669 = vmatprep.subr.bf16.mxu0 %v467_v4  ;;  %1691 = vmatprep.subr.bf16.mxu1 %v483_v5  ;;  %v1898_v9 = vunpack.i.h.bf16 %v1894_v6  ;;  %v1895_v10 = vunpack.i.l.bf16 %v1894_v6 }
 0x18f   :  { %1670 = vmatpush3.bf16.msra.mxu0 %v459_v7  ;;  %1692 = vmatpush3.bf16.msra.mxu1 %v475_v8 }
 0x190   :  { %v1995_v11 = vpop.trf.xlu1 }
 0x191   :  { %v1999_v12 = vunpack.i.h.bf16 %v1995_v11  ;;  %v1996_v13 = vunpack.i.l.bf16 %v1995_v11  ;;  %v1899_v14 = vpop.trf.xlu0 }
 0x192   :  { %v1903_v15 = vunpack.i.h.bf16 %v1899_v14  ;;  %v1900_v16 = vunpack.i.l.bf16 %v1899_v14 }
 0x193   :  { %v460_v23 = vpack.c.bf16 %v1996_v13, %v1991_v18  ;;  %v476_v24 = vpack.c.bf16 %v1999_v12, %v1994_v17 }
 0x194   :  { %v2000_v19 = vpop.trf.xlu1  ;;  %v468_v20 = vpack.c.bf16 %v1900_v16, %v1895_v10  ;;  %v484_v21 = vpack.c.bf16 %v1903_v15, %v1898_v9 }
 0x195   :  { %v1904_v22 = vpop.trf.xlu0  ;;  %v2004_v33 = vunpack.i.h.bf16 %v2000_v19  ;;  %v2001_v34 = vunpack.i.l.bf16 %v2000_v19 }
 0x196   :  { %1671 = vmatprep.subr.bf16.mxu0 %v468_v20  ;;  %1693 = vmatprep.subr.bf16.mxu1 %v484_v21  ;;  %v1908_v25 = vunpack.i.h.bf16 %v1904_v22  ;;  %v1905_v26 = vunpack.i.l.bf16 %v1904_v22 }
 0x197   :  { %1672 = vmatpush3.bf16.msra.mxu0 %v460_v23  ;;  %1694 = vmatpush3.bf16.msra.mxu1 %v476_v24 }
 0x198   :  { %v2005_v27 = vpop.trf.xlu1 }
 0x199   :  { %v2009_v28 = vunpack.i.h.bf16 %v2005_v27  ;;  %v2006_v29 = vunpack.i.l.bf16 %v2005_v27  ;;  %v1909_v30 = vpop.trf.xlu0 }
 0x19a   :  { %v1913_v31 = vunpack.i.h.bf16 %v1909_v30  ;;  %v1910_v32 = vunpack.i.l.bf16 %v1909_v30 }
 0x19b   :  { %v461_v39 = vpack.c.bf16 %v2006_v29, %v2001_v34  ;;  %v477_v40 = vpack.c.bf16 %v2009_v28, %v2004_v33 }
 0x19c   :  { %v2010_v35 = vpop.trf.xlu1  ;;  %v469_v36 = vpack.c.bf16 %v1910_v32, %v1905_v26  ;;  %v485_v37 = vpack.c.bf16 %v1913_v31, %v1908_v25 }
 0x19d   :  { %v1914_v38 = vpop.trf.xlu0  ;;  %v2014_v50 = vunpack.i.h.bf16 %v2010_v35  ;;  %v2011_v54 = vunpack.i.l.bf16 %v2010_v35 }
 0x19e   :  { %1673 = vmatprep.subr.bf16.mxu0 %v469_v36  ;;  %1695 = vmatprep.subr.bf16.mxu1 %v485_v37  ;;  %v1918_v41 = vunpack.i.h.bf16 %v1914_v38  ;;  %v1915_v42 = vunpack.i.l.bf16 %v1914_v38 }
 0x19f   :  { %1674 = vmatpush3.bf16.msra.mxu0 %v461_v39  ;;  %1696 = vmatpush3.bf16.msra.mxu1 %v477_v40 }
 0x1a0   :  { %v2015_v43 = vpop.trf.xlu1 }
 0x1a1   :  { %v2019_v45 = vunpack.i.h.bf16 %v2015_v43  ;;  %v2016_v46 = vunpack.i.l.bf16 %v2015_v43  ;;  %v1919_v47 = vpop.trf.xlu0 }
 0x1a2   :  { %v1923_v48 = vunpack.i.h.bf16 %v1919_v47  ;;  %v1920_v49 = vunpack.i.l.bf16 %v1919_v47 }
 0x1a3   :  { %v462_v59 = vpack.c.bf16 %v2016_v46, %v2011_v54  ;;  %v478_v60 = vpack.c.bf16 %v2019_v45, %v2014_v50 }
 0x1a4   :  { %v2020_v55 = vpop.trf.xlu1  ;;  %v470_v56 = vpack.c.bf16 %v1920_v49, %v1915_v42  ;;  %v486_v57 = vpack.c.bf16 %v1923_v48, %v1918_v41 }
 0x1a5   :  { %v1924_v58 = vpop.trf.xlu0  ;;  %v2024_v6 = vunpack.i.h.bf16 %v2020_v55  ;;  %v2021_v7 = vunpack.i.l.bf16 %v2020_v55 }
 0x1a6   :  { %1675 = vmatprep.subr.bf16.mxu0 %v470_v56  ;;  %1697 = vmatprep.subr.bf16.mxu1 %v486_v57  ;;  %v1928_v61 = vunpack.i.h.bf16 %v1924_v58  ;;  %v1925_v62 = vunpack.i.l.bf16 %v1924_v58 }
 0x1a7   :  { %1676 = vmatpush3.bf16.msra.mxu0 %v462_v59  ;;  %1698 = vmatpush3.bf16.msra.mxu1 %v478_v60 }
 0x1a8   :  { %v2025_v63 = vpop.trf.xlu1 }
 0x1a9   :  { %v2029_v1 = vunpack.i.h.bf16 %v2025_v63  ;;  %v2026_v2 = vunpack.i.l.bf16 %v2025_v63  ;;  %v1929_v3 = vpop.trf.xlu0  ;;  %v51_v63 = vld [vmem:[#allocation5 + $0x48] sm:$0xff] }
 0x1aa   :  { %v1933_v4 = vunpack.i.h.bf16 %v1929_v3  ;;  %v1930_v5 = vunpack.i.l.bf16 %v1929_v3 }
 0x1ab   :  { %v463_v12 = vpack.c.bf16 %v2026_v2, %v2021_v7  ;;  %v479_v13 = vpack.c.bf16 %v2029_v1, %v2024_v6  ;;  %v52_v1 = vld [vmem:[#allocation5 + $0x50] sm:$0xff]  ;;  %v54_v6 = vld [vmem:[#allocation5 + $0x60] sm:$0xff] }
 0x1ac   :  { %v2030_v8 = vpop.trf.xlu1  ;;  %v471_v9 = vpack.c.bf16 %v1930_v5, %v1925_v62  ;;  %v487_v10 = vpack.c.bf16 %v1933_v4, %v1928_v61  ;;  %v59_v3 = vpack.c.bf16 %v52_v1, %v51_v63  ;;  %v2162_v4 = vmov 0.0   ;;  %v53_v5 = vld [vmem:[#allocation5 + $0x58] sm:$0xff] }
 0x1ad   :  { %v1934_v11 = vpop.trf.xlu0  ;;  %v2034_v22 = vunpack.i.h.bf16 %v2030_v8  ;;  %v2031_v23 = vunpack.i.l.bf16 %v2030_v8  ;;  %v60_v7 = vpack.c.bf16 %v54_v6, %v53_v5  ;;  %v55_v8 = vld [vmem:[#allocation5 + $0x68] sm:$0xff]  ;;  %v1632_v63 = vld [vmem:[%s1582_s17 + $0x88] sm:$0x1] }
 0x1ae   :  { %1677 = vmatprep.subr.bf16.mxu0 %v471_v9  ;;  %1699 = vmatprep.subr.bf16.mxu1 %v487_v10  ;;  %v1938_v14 = vunpack.i.h.bf16 %v1934_v11  ;;  %v1935_v15 = vunpack.i.l.bf16 %v1934_v11  ;;  %v56_v9 = vld [vmem:[#allocation5 + $0x70] sm:$0xff]  ;;  %v57_v11 = vld [vmem:[#allocation5 + $0x78] sm:$0xff] }
 0x1af   :  { %1678 = vmatpush3.bf16.msra.mxu0 %v463_v12  ;;  %1700 = vmatpush3.bf16.msra.mxu1 %v479_v13  ;;  %v61_v10 = vpack.c.bf16 %v56_v9, %v55_v8  ;;  %v58_v12 = vld [vmem:[#allocation5 + $0x80] sm:$0xff]  ;;  %v1630_v5 = vld [vmem:[%s1580_s21 + $0x88] sm:$0x1] }
 0x1b0   :  { %v2035_v16 = vpop.trf.xlu1  ;;  %v62_v13 = vpack.c.bf16 %v58_v12, %v57_v11  ;;  %v1636_v6 = vld [vmem:[%s1586_s23 + $0x88] sm:$0x1] }
 0x1b1   :  { %v2039_v17 = vunpack.i.h.bf16 %v2035_v16  ;;  %v2036_v18 = vunpack.i.l.bf16 %v2035_v16  ;;  %v1939_v19 = vpop.trf.xlu0  ;;  %v716_v11 = vrot.slane %v1636_v6, 5 }
 0x1b2   :  { %v1943_v20 = vunpack.i.h.bf16 %v1939_v19  ;;  %v1940_v21 = vunpack.i.l.bf16 %v1939_v19 }
 0x1b3   :  { %v464_v28 = vpack.c.bf16 %v2036_v18, %v2031_v23  ;;  %v480_v29 = vpack.c.bf16 %v2039_v17, %v2034_v22 }
 0x1b4   :  { %v2040_v24 = vpop.trf.xlu1  ;;  %v472_v25 = vpack.c.bf16 %v1940_v21, %v1935_v15  ;;  %v488_v26 = vpack.c.bf16 %v1943_v20, %v1938_v14 }
 0x1b5   :  { %v1944_v27 = vpop.trf.xlu0  ;;  %v2044_v38 = vunpack.i.h.bf16 %v2040_v24  ;;  %v2041_v39 = vunpack.i.l.bf16 %v2040_v24 }
 0x1b6   :  { %1679 = vmatprep.subr.bf16.mxu0 %v472_v25  ;;  %1701 = vmatprep.subr.bf16.mxu1 %v488_v26  ;;  %v1948_v30 = vunpack.i.h.bf16 %v1944_v27  ;;  %v1945_v31 = vunpack.i.l.bf16 %v1944_v27  ;;  %v63_v25 = vld [vmem:[#allocation5 + $0xc8] sm:$0xff]  ;;  %v64_v26 = vld [vmem:[#allocation5 + $0xd0] sm:$0xff] }
 0x1b7   :  { %1680 = vmatpush3.bf16.msra.mxu0 %v464_v28  ;;  %1702 = vmatpush3.bf16.msra.mxu1 %v480_v29  ;;  %v2283_v27 = vpack.c.bf16 %v64_v26, %v63_v25  ;;  %v65_v28 = vld [vmem:[#allocation5 + $0xd8] sm:$0xff]  ;;  %v66_v29 = vld [vmem:[#allocation5 + $0xe0] sm:$0xff] }
 0x1b8   :  { %v2045_v32 = vpop.trf.xlu1 }
 0x1b9   :  { %v2049_v33 = vunpack.i.h.bf16 %v2045_v32  ;;  %v2046_v34 = vunpack.i.l.bf16 %v2045_v32  ;;  %v1949_v35 = vpop.trf.xlu0  ;;  %v70_v32 = vld [vmem:[#allocation5 + $0xf0] sm:$0xff] }
 0x1ba   :  { %v1953_v36 = vunpack.i.h.bf16 %v1949_v35  ;;  %v1950_v37 = vunpack.i.l.bf16 %v1949_v35  ;;  %v72_v35 = vld [vmem:[#allocation5 + $0x100] sm:$0xff] }
 0x1bb   :  { %v465_v45 = vpack.c.bf16 %v2046_v34, %v2041_v39  ;;  %v481_v46 = vpack.c.bf16 %v2049_v33, %v2044_v38  ;;  %v71_v34 = vld [vmem:[#allocation5 + $0xf8] sm:$0xff] }
 0x1bc   :  { %v2050_v40 = vpop.trf.xlu1  ;;  %v473_v41 = vpack.c.bf16 %v1950_v37, %v1945_v31  ;;  %v489_v42 = vpack.c.bf16 %v1953_v36, %v1948_v30  ;;  %v2287_v30 = vpack.c.bf16 %v66_v29, %v65_v28  ;;  %v69_v31 = vld [vmem:[#allocation5 + $0xe8] sm:$0xff]  ;;  %v2295_v36 = vpack.c.bf16 %v72_v35, %v71_v34  ;;  %v1626_v37 = vld [vmem:[#allocation5] ss:$0 sm:$0xff]  ;;  %v1644_v35 = vld [vmem:[%s1594_s8 + $0x88] sm:$0x1] }
 0x1bd   :  { %v1954_v43 = vpop.trf.xlu0  ;;  %v2054_v58 = vunpack.i.h.bf16 %v2050_v40  ;;  %v2051_v59 = vunpack.i.l.bf16 %v2050_v40  ;;  %v2291_v33 = vpack.c.bf16 %v70_v32, %v69_v31  ;;  %v1629_v32 = vld [vmem:[#allocation5 + $0x2] ss:$0 sm:$0xff] }
 0x1be   :  { %1681 = vmatprep.subr.bf16.mxu0 %v473_v41  ;;  %1703 = vmatprep.subr.bf16.mxu1 %v489_v42  ;;  %v1958_v47 = vunpack.i.h.bf16 %v1954_v43  ;;  %v1955_v48 = vunpack.i.l.bf16 %v1954_v43 }
 0x1bf   :  { %1682 = vmatpush3.bf16.msra.mxu0 %v465_v45  ;;  %1704 = vmatpush3.bf16.msra.mxu1 %v481_v46 }
 0x1c0   :  { %v2055_v49 = vpop.trf.xlu1 }
 0x1c1   :  { %v2059_v50 = vunpack.i.h.bf16 %v2055_v49  ;;  %v2056_v54 = vunpack.i.l.bf16 %v2055_v49  ;;  %v1959_v55 = vpop.trf.xlu0 }
 0x1c2   :  { %v1963_v56 = vunpack.i.h.bf16 %v1959_v55  ;;  %v1960_v57 = vunpack.i.l.bf16 %v1959_v55 }
 0x1c3   :  { %v466_v52 = vpack.c.bf16 %v2056_v54, %v2051_v59  ;;  %v482_v2 = vpack.c.bf16 %v2059_v50, %v2054_v58 }
 0x1c4   :  { %v474_v61 = vpack.c.bf16 %v1960_v57, %v1955_v48  ;;  %v490_v51 = vpack.c.bf16 %v1963_v56, %v1958_v47 }
 0x1c6   :  { %1683 = vmatprep.subr.bf16.mxu0 %v474_v61  ;;  %1705 = vmatprep.subr.bf16.mxu1 %v490_v51 }
 0x1c7   :  { %1684 = vmatpush3.bf16.msra.mxu0 %v466_v52  ;;  %1706 = vmatpush3.bf16.msra.mxu1 %v482_v2  ;;  %v1634_v52 = vld [vmem:[%s1584_s0 + $0x88] sm:$0x1]  ;;  %v710_v2 = vrot.slane %v1632_v63, 7 }
 0x1c8   :  { %1751 = vmatprep.subr.bf16.mxu0 %v2162_v4  ;;  %1763 = vmatprep.subr.bf16.mxu1 %v2162_v4  ;;  %v713_v8 = vrot.slane %v1634_v52, 6 }
 0x1c9   :  { %v746_v9 = vsel %vm745_vm6, %v1630_v5, %v710_v2 }
 0x1ca   :  { %1621 = vmatmul.mubr.msk.bf16.vlgmr.msra.gmra.mrb[16].mxu0 %vm1620_vm1, %v2161_v53  ;;  %1625 = vmatmul.mubr.msk.bf16.vlgmr.msra.gmra.mrb[16].mxu1 %vm1624_vm2, %v2161_v53  ;;  %vm934_vm1 = vcmask 254977   ;;  %vm1092_vm2 = vcmask 256002  }
 0x1cb   :  { %1752 = vmatpush3.bf16.msra.mxu0 %v59_v3  ;;  %1759 = vmatprep.mubr.msk.bf16.mxu0 %vm2163_vm3, %v2162_v4 }
 0x1cc   :  { %1753 = vmatprep.subr.bf16.mxu0 %v2162_v4  ;;  %1767 = vmatprep.mubr.msk.bf16.mxu1 %vm2163_vm3, %v2162_v4 }
 0x1cd   :  { %1764 = vmatpush3.bf16.msra.mxu1 %v2283_v27 }
 0x1ce   :  { %1765 = vmatprep.subr.bf16.mxu1 %v2162_v4 }
 0x1cf   :  { %1754 = vmatpush3.bf16.msra.mxu0 %v60_v7  ;;  %v1648_v7 = vld [vmem:[%s1598_s24 + $0x88] sm:$0x1] }
 0x1d0   :  { %1755 = vmatprep.subr.bf16.mxu0 %v2162_v4  ;;  %v731_v12 = vrot.slane %v1648_v7, 7 }
 0x1d1   :  { %1766 = vmatpush3.bf16.msra.mxu1 %v2287_v30 }
 0x1d2   :  { %1771 = vmatprep.subr.bf16.mxu1 %v2162_v4 }
 0x1d3   :  { %1756 = vmatpush3.bf16.msra.mxu0 %v61_v10  ;;  %v1650_v10 = vld [vmem:[%s1600_s29 + $0x88] sm:$0x1] }
 0x1d4   :  { %1757 = vmatprep.subr.bf16.mxu0 %v2162_v4 }
 0x1d7   :  { %1758 = vmatpush3.bf16.msra.mxu0 %v62_v13  ;;  %v1638_v13 = vld [vmem:[%s1588_s30 + $0x88] sm:$0x1] }
 0x1d8   :  { %1787 = vmatprep.subr.bf16.mxu0 %v2162_v4 }
 0x29d   :  { %v1685_v53 = vpop.f32.mrb[16].mxu0  ;;  %v1707_v14 = vpop.f32.mrb[16].mxu1 }
 0x29e   :  { %v1686_v15 = vpop.f32.mrb[17].mxu0  ;;  %v1708_v16 = vpop.f32.mrb[17].mxu1 }
 0x29f   :  { %v1687_v17 = vadd.f32 %v1686_v15, %v1685_v53  ;;  %v1709_v18 = vadd.f32 %v1708_v16, %v1707_v14  ;;  %v1688_v19 = vpop.f32.mrb[18].mxu0  ;;  %v1710_v20 = vpop.f32.mrb[18].mxu1  ;;  %v1646_v53 = vld [vmem:[%s1596_s4 + $0x88] sm:$0x1]  ;;  %v747_v14 = vsel %vm108_vm0, %v746_v9, %v713_v8  ;;  %v734_v15 = vrot.slane %v1650_v10, 6 }
 0x2a0   :  { %v1689_v21 = vpop.f32.mrb[19].mxu0  ;;  %v1711_v22 = vpop.f32.mrb[19].mxu1  ;;  %v1640_v16 = vld [vmem:[%s1590_s5 + $0x88] sm:$0x1]  ;;  %v749_v19 = vsel %vm748_vm7, %v747_v14, %v716_v11  ;;  %v758_v20 = vsel %vm745_vm6, %v1646_v53, %v731_v12  ;;  %vm1264_vm6 = vcmask 261127  }
 0x2a1   :  { %v566_v23 = vadd.f32 %v1709_v18, %v1687_v17  ;;  %v1652_v17 = vld [vmem:[%s1602_s6 + $0x88] sm:$0x1]  ;;  %v719_v18 = vrot.slane %v1638_v13, 4  ;;  %v1628_v21 = vld [vmem:[#allocation5 + $0x1] ss:$0 sm:$0xff]  ;;  %v722_v25 = vrot.slane %v1640_v16, 3  ;;  %v759_v28 = vsel %vm108_vm0, %v758_v20, %v734_v15 }
 0x2a2   :  { %v1642_v22 = vld [vmem:[%s1592_s2 + $0x88] sm:$0x1]  ;;  %v737_v26 = vrot.slane %v1652_v17, 5  ;;  %vm768_vm0 = vcmask 261120  }
 0x2a3   :  { %v571_v24 = vpack.c.bf16 %v566_v23, %v566_v23  ;;  %v751_v31 = vsel %vm750_vm8, %v749_v19, %v719_v18 }
 0x2a5   :  { %1760 = vmatmul.mubr.msk.bf16.vlgmr.msra.gmra.mrb[20].mxu0 %vm576_vm4, %v571_v24  ;;  %v1654_v24 = vld [vmem:[%s1604_s7 + $0x88] sm:$0x1] }
 0x2a6   :  { %1791 = vmatprep.mubr.msk.bf16.mxu0 %vm2163_vm3, %v2162_v4  ;;  %1788 = vmatpush3.bf16.msra.mxu0 %v2291_v33 }
 0x2a7   :  { %1789 = vmatprep.subr.bf16.mxu0 %v2162_v4 }
 0x2aa   :  { %1790 = vmatpush3.bf16.msra.mxu0 %v2295_v36 }
 0x2ab   :  { %1795 = vmatprep.subr.bf16.mxu0 %v2162_v4 }
 0x378   :  { %v614_v38 = vpop.f32.mrb[20].mxu0 }
 0x379   :  { %v615_v39 = vadd.f32 %v1626_v37, %v614_v38  ;;  %v1761_v40 = vpop.f32.mrb[21].mxu0  ;;  %v1656_v37 = vld [vmem:[%s1606_s9 + $0x88] sm:$0x1]  ;;  %v725_v38 = vrot.slane %v1642_v22, 2 }
 0x37a   :  { %v617_v41 = vpop.f32.mrb[22].mxu0  ;;  %v753_v40 = vsel %vm752_vm9, %v751_v31, %v722_v25 }
 0x37b   :  { %v621_v42 = vsel %vm620_vm5, %v615_v39, 0.0  ;;  %v1762_v43 = vpop.f32.mrb[23].mxu0  ;;  %v760_v41 = vsel %vm748_vm7, %v759_v28, %v737_v26  ;;  %vm1177_vm7 = vcmask 258052  }
 0x37c   :  { %v622_v45 = vrot.slane %v621_v42, 4  ;;  %v728_v43 = vrot.slane %v1644_v35, 1 }
 0x37e   :  { %v623_v46 = vadd.f32 %v622_v45, %v621_v42  ;;  %v743_v45 = vrot.slane %v1656_v37, 3 }
 0x380   :  { %v624_v47 = vrot.slane %v623_v46, 2 }
 0x382   :  { %v625_v48 = vadd.f32 %v624_v47, %v623_v46  ;;  %v755_v47 = vsel %vm754_vm10, %v753_v40, %v725_v38 }
 0x384   :  { %v626_v49 = vrot.slane %v625_v48, 1 }
 0x386   :  { %v627_v50 = vadd.f32 %v626_v49, %v625_v48  ;;  %v757_v49 = vsel %vm756_vm11, %v755_v47, %v728_v43 }
 0x388   :  { %v629_v54 = vmul.f32 0.5, %v627_v50 }
 0x38a   :  { %v2299_v55 = vsub.f32 %v615_v39, %v629_v54  ;;  %v740_v39 = vrot.slane %v1654_v24, 4 }
 0x38c   :  { %v631_v56 = vmul.f32 %v2299_v55, %v2299_v55  ;;  %v761_v48 = vsel %vm750_vm8, %v760_v41, %v740_v39  ;;  %vm1179_vm8 = vcmask 259077  }
 0x38d   :  { %v762_v50 = vsel %vm752_vm9, %v761_v48, %v743_v45 }
 0x38e   :  { %v632_v57 = vsel %vm620_vm5, %v631_v56, 0.0  ;;  %v812_v54 = vpack.c.bf16 %v762_v50, %v757_v49  ;;  %vm1262_vm5 = vcmask 260102  }
 0x38f   :  { %v633_v58 = vrot.slane %v632_v57, 4 }
 0x391   :  { %v634_v59 = vadd.f32 %v633_v58, %v632_v57 }
 0x393   :  { %v635_v60 = vrot.slane %v634_v59, 2 }
 0x395   :  { %v636_v61 = vadd.f32 %v635_v60, %v634_v59  ;;  %v2164_v60 = vmov 0.5  }
 0x397   :  { %v637_v51 = vrot.slane %v636_v61, 1 }
 0x399   :  { %v638_v62 = vadd.f32 %v637_v51, %v636_v61  ;;  %v2374_v61 = vsel %vm2368_vm14, 1.0, %v2164_v60 }
 0x39b   :  { %v639_v1 = vmul.f32 0.5, %v638_v62 }
 0x39d   :  { %v640_v3 = vadd.f32 1e-05, %v639_v1 }
 0x39f   :  { %2060 = vrsqrt.f32 %v640_v3 }
 0x3a9   :  { %v2061_v23 = vpop.eup %2060 }
 0x3aa   :  { %v642_v29 = vmul.f32 %v2061_v23, %v2299_v55 }
 0x3ac   :  { %v647_v34 = vmul.f32 %v1628_v21, %v642_v29 }
 0x3ae   :  { %v652_v42 = vadd.f32 %v1629_v32, %v647_v34 }
 0x3b0   :  { %v763_v46 = vpack.c.bf16 %v652_v42, %v652_v42 }
 0x3b2   :  { %1768 = vmatmul.mubr.msk.bf16.vlgmr.msra.gmra.mrb[20].mxu1 %vm768_vm0, %v763_v46 }
 0x3b3   :  { %1772 = vmatpush3.bf16.msra.mxu1 %v2283_v27  ;;  %1775 = vmatprep.mubr.msk.bf16.mxu1 %vm2163_vm3, %v2162_v4  ;;  %v1657_v27 = vld [vmem:[#allocation5 + $0x3] ss:$0 sm:$0xff] }
 0x3b4   :  { %1773 = vmatprep.subr.bf16.mxu1 %v2162_v4 }
 0x3b7   :  { %1774 = vmatpush3.bf16.msra.mxu1 %v2287_v30 }
 0x3b8   :  { %1779 = vmatprep.subr.bf16.mxu1 %v2162_v4 }
 0x3ba   :  { %1776 = vmatmul.mubr.msk.bf16.vlgmr.msra.gmra.mrb[24].mxu1 %vm768_vm0, %v812_v54 }
 0x3bb   :  { %1780 = vmatpush3.bf16.msra.mxu1 %v2291_v33  ;;  %1783 = vmatprep.mubr.msk.bf16.mxu1 %vm2163_vm3, %v2162_v4 }
 0x3bc   :  { %1781 = vmatprep.subr.bf16.mxu1 %v2162_v4 }
 0x3bf   :  { %1782 = vmatpush3.bf16.msra.mxu1 %v2295_v36 }
 0x3c0   :  { %1803 = vmatprep.subr.bf16.mxu1 %v2162_v4 }
 0x3c2   :  { %1784 = vmatmul.mubr.bf16.vlgmr.msra.gmra.mrb[20].mxu1 %v2160_v0 }
 0x3c3   :  { %1804 = vmatpush3.bf16.msra.mxu1 %v2291_v33  ;;  %1807 = vmatprep.mubr.msk.bf16.mxu1 %vm2163_vm3, %v2162_v4 }
 0x3c4   :  { %1805 = vmatprep.subr.bf16.mxu1 %v2162_v4 }
 0x3c7   :  { %1806 = vmatpush3.bf16.msra.mxu1 %v2295_v36 }
 0x3c8   :  { %1819 = vmatprep.subr.bf16.mxu1 %v2162_v4 }
 0x48d   :  { %v850_v30 = vpop.f32.mrb[24].mxu1 }
 0x48e   :  { %v2362_v55 = vadd.f32 %v1657_v27, %v850_v30  ;;  %v1777_v56 = vpop.f32.mrb[25].mxu1 }
 0x48f   :  { %v853_v0 = vpop.f32.mrb[26].mxu1 }
 0x490   :  { %v2366_v57 = vadd.f32 %v1657_v27, %v853_v0  ;;  %v1778_v58 = vpop.f32.mrb[27].mxu1 }
 0x495   :  { %v898_v51 = vpop.f32.mrb[20].mxu1 }
 0x496   :  { %v1851_v62 = vadd.f32 %v1657_v27, %v898_v51  ;;  %v1785_v63 = vpop.f32.mrb[21].mxu1 }
 0x497   :  { %v901_v1 = vpop.f32.mrb[22].mxu1 }
 0x498   :  { %v905_v52 = vmul.f32 %v1851_v62, %v2374_v61  ;;  %v1786_v44 = vpop.f32.mrb[23].mxu1 }
 0x49a   :  { %2062 = vtanh.f32 %v905_v52 }
 0x4a4   :  { %v2063_v2 = vpop.eup %2062 }
 0x4a5   :  { %v907_v3 = vmul.f32 0.5, %v2063_v2 }
 0x4a7   :  { %v908_v5 = vadd.f32 0.5, %v907_v3 }
 0x4a9   :  { %v909_v6 = vsel %vm2368_vm14, %v2063_v2, %v908_v5 }
 0x4aa   :  { %912 = vrot.lane.b32.xlu0 %v909_v6, %s2165_s1  ;;  %v910_v9 = vmul.f32 0.0, %v909_v6 }
 0x51c   :  { %v913_v7 = vpop.permute.xlu0 %912 }
 0x51d   :  { %v915_v8 = vmul.f32 %v913_v7, %v909_v6 }
 0x51f   :  { %917 = vrot.lane.b32.xlu1 %v915_v8, %s2166_s10 }
 0x591   :  { %v918_v10 = vpop.permute.xlu1 %917 }
 0x592   :  { %v920_v11 = vadd.f32 %v918_v10, %v910_v9 }
 0x594   :  { %2064 = vtanh.f32 %v920_v11 }
 0x59e   :  { %v2065_v12 = vpop.eup %2064 }
 0x59f   :  { %923 = vrot.lane.b32.xlu1 %v2065_v12, %s2165_s1 }
 0x611   :  { %v924_v13 = vpop.permute.xlu1 %923 }
 0x612   :  { %v2382_v53 = vmul.f32 %v924_v13, %v909_v6 }
 0x614   :  { %v927_v14 = vpack.c.bf16 %v2382_v53, %v2382_v53 }
 0x616   :  { %937 = vrot.lane.b32.xlu1 %v927_v14, %s2166_s10 }
 0x688   :  { %v938_v15 = vpop.permute.xlu1 %937 }
 0x689   :  { %1792 = vmatmul.mubr.msk.bf16.vlgmr.msra.gmra.mrb[24].mxu0 %vm768_vm0, %v938_v15 }
 0x68a   :  { %1796 = vmatpush3.bf16.msra.mxu0 %v2291_v33  ;;  %1799 = vmatprep.mubr.msk.bf16.mxu0 %vm2163_vm3, %v2162_v4 }
 0x68b   :  { %1797 = vmatprep.subr.bf16.mxu0 %v2162_v4 }
 0x68e   :  { %1798 = vmatpush3.bf16.msra.mxu0 %v2295_v36 }
 0x68f   :  { %1811 = vmatprep.subr.bf16.mxu0 %v2162_v4 }
 0x75c   :  { %v976_v16 = vpop.f32.mrb[24].mxu0 }
 0x75d   :  { %v982_v17 = vadd.f32 %v976_v16, %v2362_v55  ;;  %v1793_v18 = vpop.f32.mrb[25].mxu0 }
 0x75e   :  { %v979_v19 = vpop.f32.mrb[26].mxu0 }
 0x75f   :  { %v983_v20 = vmul.f32 %v982_v17, %v2374_v61  ;;  %v1794_v21 = vpop.f32.mrb[27].mxu0 }
 0x761   :  { %2066 = vtanh.f32 %v983_v20 }
 0x76b   :  { %v2067_v22 = vpop.eup %2066 }
 0x76c   :  { %v985_v23 = vmul.f32 0.5, %v2067_v22 }
 0x76e   :  { %v986_v24 = vadd.f32 0.5, %v985_v23 }
 0x770   :  { %v987_v25 = vsel %vm2368_vm14, %v2067_v22, %v986_v24 }
 0x771   :  { %990 = vrot.lane.b32.xlu1 %v987_v25, %s2165_s1  ;;  %v988_v29 = vmul.f32 %v987_v25, %v920_v11 }
 0x7e3   :  { %v991_v26 = vpop.permute.xlu1 %990 }
 0x7e4   :  { %v993_v28 = vmul.f32 %v991_v26, %v987_v25 }
 0x7e6   :  { %995 = vrot.lane.b32.xlu0 %v993_v28, %s2166_s10 }
 0x858   :  { %v996_v31 = vpop.permute.xlu0 %995 }
 0x859   :  { %v998_v32 = vadd.f32 %v996_v31, %v988_v29 }
 0x85b   :  { %2068 = vtanh.f32 %v998_v32  ;;  %v1068_v56 = vrot.slane %v998_v32, 6 }
 0x865   :  { %v2069_v34 = vpop.eup %2068 }
 0x866   :  { %1001 = vrot.lane.b32.xlu1 %v2069_v34, %s2165_s1 }
 0x8d8   :  { %v1002_v35 = vpop.permute.xlu1 %1001 }
 0x8d9   :  { %v2401_v37 = vmul.f32 %v1002_v35, %v987_v25 }
 0x8db   :  { %v1005_v38 = vpack.c.bf16 %v2401_v37, %v2401_v37 }
 0x8dd   :  { %1013 = vrot.lane.b32.xlu0 %v1005_v38, %s2166_s10 }
 0x94f   :  { %v1014_v39 = vpop.permute.xlu0 %1013 }
 0x950   :  { %1800 = vmatmul.mubr.msk.bf16.vlgmr.msra.gmra.mrb[28].mxu0 %vm768_vm0, %v1014_v39 }
 0x951   :  { %1812 = vmatpush3.bf16.msra.mxu0 %v2291_v33  ;;  %1815 = vmatprep.mubr.msk.bf16.mxu0 %vm2163_vm3, %v2162_v4 }
 0x952   :  { %1813 = vmatprep.subr.bf16.mxu0 %v2162_v4 }
 0x955   :  { %1814 = vmatpush3.bf16.msra.mxu0 %v2295_v36 }
 0x956   :  { %1827 = vmatprep.subr.bf16.mxu0 %v2162_v4 }
 0xa23   :  { %v1052_v40 = vpop.f32.mrb[28].mxu0 }
 0xa24   :  { %v1059_v41 = vrot.slane %v1052_v40, 6  ;;  %v1801_v42 = vpop.f32.mrb[29].mxu0 }
 0xa25   :  { %v1055_v43 = vpop.f32.mrb[30].mxu0 }
 0xa26   :  { %v1061_v45 = vadd.f32 %v1059_v41, %v2362_v55  ;;  %v1802_v46 = vpop.f32.mrb[31].mxu0 }
 0xa28   :  { %v1062_v47 = vmul.f32 %v1061_v45, %v2374_v61 }
 0xa2a   :  { %2070 = vtanh.f32 %v1062_v47 }
 0xa34   :  { %v2071_v48 = vpop.eup %2070 }
 0xa35   :  { %v1064_v49 = vmul.f32 0.5, %v2071_v48 }
 0xa37   :  { %v1065_v50 = vadd.f32 0.5, %v1064_v49 }
 0xa39   :  { %v1066_v54 = vsel %vm2368_vm14, %v2071_v48, %v1065_v50 }
 0xa3a   :  { %1072 = vrot.lane.b32.xlu1 %v1066_v54, %s2165_s1  ;;  %v1070_v0 = vmul.f32 %v1068_v56, %v1066_v54 }
 0xaac   :  { %v1073_v27 = vpop.permute.xlu1 %1072 }
 0xaad   :  { %v1075_v30 = vmul.f32 %v1073_v27, %v1066_v54 }
 0xaaf   :  { %1077 = vrot.lane.b32.xlu0 %v1075_v30, %s2166_s10 }
 0xb21   :  { %v1078_v58 = vpop.permute.xlu0 %1077 }
 0xb22   :  { %v1080_v60 = vadd.f32 %v1078_v58, %v1070_v0 }
 0xb24   :  { %2072 = vtanh.f32 %v1080_v60  ;;  %v1153_v16 = vrot.slane %v1080_v60, 6 }
 0xb2e   :  { %v2073_v51 = vpop.eup %2072 }
 0xb2f   :  { %1083 = vrot.lane.b32.xlu1 %v2073_v51, %s2165_s1 }
 0xba1   :  { %v1084_v62 = vpop.permute.xlu1 %1083 }
 0xba2   :  { %v2420_v63 = vmul.f32 %v1084_v62, %v1066_v54 }
 0xba4   :  { %v1087_v1 = vpack.c.bf16 %v2420_v63, %v2420_v63 }
 0xba6   :  { %v1097_v52 = vrot.slane %v1087_v1, 1 }
 0xba8   :  { %1098 = vrot.lane.b32.xlu0 %v1097_v52, %s2166_s10 }
 0xc1a   :  { %v1099_v44 = vpop.permute.xlu0 %1098 }
 0xc1b   :  { %1808 = vmatmul.mubr.msk.bf16.vlgmr.msra.gmra.mrb[28].mxu1 %vm768_vm0, %v1099_v44 }
 0xc1c   :  { %1820 = vmatpush3.bf16.msra.mxu1 %v2291_v33  ;;  %1823 = vmatprep.mubr.msk.bf16.mxu1 %vm2163_vm3, %v2162_v4 }
 0xc1d   :  { %1821 = vmatprep.subr.bf16.mxu1 %v2162_v4 }
 0xc20   :  { %1822 = vmatpush3.bf16.msra.mxu1 %v2295_v36 }
 0xc21   :  { %1835 = vmatprep.subr.bf16.mxu1 %v2162_v4 }
 0xcee   :  { %v1137_v2 = vpop.f32.mrb[28].mxu1 }
 0xcef   :  { %v1144_v3 = vrot.slane %v1137_v2, 4  ;;  %v1809_v5 = vpop.f32.mrb[29].mxu1 }
 0xcf0   :  { %v1140_v6 = vpop.f32.mrb[30].mxu1 }
 0xcf1   :  { %v1146_v7 = vadd.f32 %v1144_v3, %v2362_v55  ;;  %v1810_v8 = vpop.f32.mrb[31].mxu1 }
 0xcf3   :  { %v1147_v9 = vmul.f32 %v1146_v7, %v2374_v61 }
 0xcf5   :  { %2074 = vtanh.f32 %v1147_v9 }
 0xcff   :  { %v2075_v10 = vpop.eup %2074 }
 0xd00   :  { %v1149_v11 = vmul.f32 0.5, %v2075_v10 }
 0xd02   :  { %v1150_v12 = vadd.f32 0.5, %v1149_v11 }
 0xd04   :  { %v1151_v13 = vsel %vm2368_vm14, %v2075_v10, %v1150_v12 }
 0xd05   :  { %1157 = vrot.lane.b32.xlu1 %v1151_v13, %s2165_s1  ;;  %v1155_v17 = vmul.f32 %v1153_v16, %v1151_v13 }
 0xd77   :  { %v1158_v14 = vpop.permute.xlu1 %1157 }
 0xd78   :  { %v1160_v15 = vmul.f32 %v1158_v14, %v1151_v13 }
 0xd7a   :  { %1162 = vrot.lane.b32.xlu0 %v1160_v15, %s2166_s10 }
 0xdec   :  { %v1163_v18 = vpop.permute.xlu0 %1162 }
 0xded   :  { %v1165_v19 = vadd.f32 %v1163_v18, %v1155_v17 }
 0xdef   :  { %2076 = vtanh.f32 %v1165_v19  ;;  %v1238_v45 = vrot.slane %v1165_v19, 6 }
 0xdf9   :  { %v2077_v20 = vpop.eup %2076 }
 0xdfa   :  { %1168 = vrot.lane.b32.xlu1 %v2077_v20, %s2165_s1 }
 0xe6c   :  { %v1169_v21 = vpop.permute.xlu1 %1168 }
 0xe6d   :  { %v2439_v22 = vmul.f32 %v1169_v21, %v1151_v13 }
 0xe6f   :  { %v1172_v23 = vpack.c.bf16 %v2439_v22, %v2439_v22 }
 0xe71   :  { %v1182_v24 = vrot.slane %v1172_v23, 2 }
 0xe73   :  { %1183 = vrot.lane.b32.xlu0 %v1182_v24, %s2166_s10 }
 0xee5   :  { %v1184_v25 = vpop.permute.xlu0 %1183 }
 0xee6   :  { %1816 = vmatmul.mubr.msk.bf16.vlgmr.msra.gmra.mrb[32].mxu0 %vm768_vm0, %v1184_v25 }
 0xee7   :  { %1828 = vmatpush3.bf16.msra.mxu0 %v2291_v33  ;;  %1831 = vmatprep.mubr.msk.bf16.mxu0 %vm2163_vm3, %v2162_v4 }
 0xee8   :  { %1829 = vmatprep.subr.bf16.mxu0 %v2162_v4 }
 0xeeb   :  { %1830 = vmatpush3.bf16.msra.mxu0 %v2295_v36 }
 0xeec   :  { %1843 = vmatprep.subr.bf16.mxu0 %v2162_v4 }
 0xfb9   :  { %v1222_v26 = vpop.f32.mrb[32].mxu0 }
 0xfba   :  { %v1229_v28 = vrot.slane %v1222_v26, 2  ;;  %v1817_v29 = vpop.f32.mrb[33].mxu0 }
 0xfbb   :  { %v1225_v31 = vpop.f32.mrb[34].mxu0 }
 0xfbc   :  { %v1231_v32 = vadd.f32 %v1229_v28, %v2362_v55  ;;  %v1818_v34 = vpop.f32.mrb[35].mxu0 }
 0xfbe   :  { %v1232_v35 = vmul.f32 %v1231_v32, %v2374_v61 }
 0xfc0   :  { %2078 = vtanh.f32 %v1232_v35 }
 0xfca   :  { %v2079_v38 = vpop.eup %2078 }
 0xfcb   :  { %v1234_v39 = vmul.f32 0.5, %v2079_v38 }
 0xfcd   :  { %v1235_v40 = vadd.f32 0.5, %v1234_v39 }
 0xfcf   :  { %v1236_v41 = vsel %vm2368_vm14, %v2079_v38, %v1235_v40 }
 0xfd0   :  { %1242 = vrot.lane.b32.xlu1 %v1236_v41, %s2165_s1  ;;  %v1240_v46 = vmul.f32 %v1238_v45, %v1236_v41 }
0x1042   :  { %v1243_v42 = vpop.permute.xlu1 %1242 }
0x1043   :  { %v1245_v43 = vmul.f32 %v1243_v42, %v1236_v41 }
0x1045   :  { %1247 = vrot.lane.b32.xlu0 %v1245_v43, %s2166_s10 }
0x10b7   :  { %v1248_v47 = vpop.permute.xlu0 %1247 }
0x10b8   :  { %v1250_v55 = vadd.f32 %v1248_v47, %v1240_v46 }
0x10ba   :  { %2080 = vtanh.f32 %v1250_v55 }
0x10c4   :  { %v2081_v48 = vpop.eup %2080 }
0x10c5   :  { %1253 = vrot.lane.b32.xlu1 %v2081_v48, %s2165_s1 }
0x1137   :  { %v1254_v49 = vpop.permute.xlu1 %1253 }
0x1138   :  { %v2458_v50 = vmul.f32 %v1254_v49, %v1236_v41 }
0x113a   :  { %v1257_v54 = vpack.c.bf16 %v2458_v50, %v2458_v50 }
0x113c   :  { %v1267_v27 = vrot.slane %v1257_v54, 3 }
0x113e   :  { %1268 = vrot.lane.b32.xlu0 %v1267_v27, %s2166_s10 }
0x11b0   :  { %v1269_v30 = vpop.permute.xlu0 %1268 }
0x11b1   :  { %1824 = vmatmul.mubr.msk.bf16.vlgmr.msra.gmra.mrb[32].mxu1 %vm768_vm0, %v1269_v30 }
0x11b2   :  { %1836 = vmatpush3.bf16.msra.mxu1 %v2291_v33  ;;  %1839 = vmatprep.mubr.msk.bf16.mxu1 %vm2163_vm3, %v2162_v4 }
0x11b3   :  { %1837 = vmatprep.subr.bf16.mxu1 %v2162_v4 }
0x11b6   :  { %1838 = vmatpush3.bf16.msra.mxu1 %v2295_v36  ;;  %v1320_v36 = vrot.slane %v1250_v55, 6 }
0x1284   :  { %v1307_v56 = vpop.f32.mrb[32].mxu1 }
0x1285   :  { %v1313_v0 = vadd.f32 %v1307_v56, %v2366_v57  ;;  %v1825_v58 = vpop.f32.mrb[33].mxu1 }
0x1286   :  { %v1310_v60 = vpop.f32.mrb[34].mxu1 }
0x1287   :  { %v1314_v51 = vmul.f32 %v1313_v0, %v2374_v61  ;;  %v1826_v62 = vpop.f32.mrb[35].mxu1 }
0x1288   :  { %v75_v62 = vld [vmem:[#allocation5 + $0x108] sm:$0xff] }
0x1289   :  { %2082 = vtanh.f32 %v1314_v51 }
0x1293   :  { %v2083_v1 = vpop.eup %2082 }
0x1294   :  { %v1316_v52 = vmul.f32 0.5, %v2083_v1 }
0x1296   :  { %v1317_v44 = vadd.f32 0.5, %v1316_v52  ;;  %v77_v52 = vld [vmem:[#allocation5 + $0x118] sm:$0xff] }
0x1298   :  { %v1318_v33 = vsel %vm2368_vm14, %v2083_v1, %v1317_v44  ;;  %v76_v1 = vld [vmem:[#allocation5 + $0x110] sm:$0xff] }
0x1299   :  { %1324 = vrot.lane.b32.xlu1 %v1318_v33, %s2165_s1  ;;  %v1322_v5 = vmul.f32 %v1320_v36, %v1318_v33  ;;  %v79_v44 = vpack.c.bf16 %v76_v1, %v75_v62 }
0x130b   :  { %v1325_v2 = vpop.permute.xlu1 %1324 }
0x130c   :  { %v1327_v3 = vmul.f32 %v1325_v2, %v1318_v33 }
0x130e   :  { %1329 = vrot.lane.b32.xlu0 %v1327_v3, %s2166_s10 }
0x1380   :  { %v1330_v6 = vpop.permute.xlu0 %1329 }
0x1381   :  { %v1332_v7 = vadd.f32 %v1330_v6, %v1322_v5 }
0x1383   :  { %2084 = vtanh.f32 %v1332_v7  ;;  %v1402_v28 = vrot.slane %v1332_v7, 6 }
0x138d   :  { %v2085_v8 = vpop.eup %2084 }
0x138e   :  { %1335 = vrot.lane.b32.xlu1 %v2085_v8, %s2165_s1 }
0x1400   :  { %v1336_v9 = vpop.permute.xlu1 %1335 }
0x1401   :  { %v2476_v10 = vmul.f32 %v1336_v9, %v1318_v33  ;;  %v78_v33 = vld [vmem:[#allocation5 + $0x120] sm:$0xff] }
0x1402   :  { %v80_v2 = vpack.c.bf16 %v78_v33, %v77_v52  ;;  %v1667_v9 = vld [vmem:[#allocation5 + $0x4] ss:$0 sm:$0xff] }
0x1403   :  { %v1339_v11 = vpack.c.bf16 %v2476_v10, %v2476_v10 }
0x1405   :  { %1347 = vrot.lane.b32.xlu0 %v1339_v11, %s2166_s10 }
0x1477   :  { %v1348_v12 = vpop.permute.xlu0 %1347 }
0x1478   :  { %1832 = vmatmul.mubr.msk.bf16.vlgmr.msra.gmra.mrb[36].mxu0 %vm768_vm0, %v1348_v12 }
0x1479   :  { %1847 = vmatprep.mubr.msk.bf16.mxu0 %vm2163_vm3, %v2162_v4  ;;  %vm1094_vm3 = vcmask 257027   ;;  %1844 = vmatpush3.bf16.msra.mxu0 %v79_v44 }
0x147a   :  { %1845 = vmatprep.subr.bf16.mxu0 %v2162_v4 }
0x147d   :  { %1846 = vmatpush3.bf16.msra.mxu0 %v80_v2 }
0x154b   :  { %v1386_v13 = vpop.f32.mrb[36].mxu0 }
0x154c   :  { %v1393_v14 = vrot.slane %v1386_v13, 6  ;;  %v1833_v15 = vpop.f32.mrb[37].mxu0 }
0x154d   :  { %v1389_v16 = vpop.f32.mrb[38].mxu0 }
0x154e   :  { %v1395_v17 = vadd.f32 %v1393_v14, %v2366_v57  ;;  %v1834_v18 = vpop.f32.mrb[39].mxu0 }
0x1550   :  { %v1396_v19 = vmul.f32 %v1395_v17, %v2374_v61 }
0x1552   :  { %2086 = vtanh.f32 %v1396_v19 }
0x155c   :  { %v2087_v20 = vpop.eup %2086 }
0x155d   :  { %v1398_v21 = vmul.f32 0.5, %v2087_v20 }
0x155f   :  { %v1399_v23 = vadd.f32 0.5, %v1398_v21 }
0x1561   :  { %v1400_v24 = vsel %vm2368_vm14, %v2087_v20, %v1399_v23 }
0x1562   :  { %1406 = vrot.lane.b32.xlu1 %v1400_v24, %s2165_s1  ;;  %v1404_v29 = vmul.f32 %v1402_v28, %v1400_v24 }
0x15d4   :  { %v1407_v25 = vpop.permute.xlu1 %1406 }
0x15d5   :  { %v1409_v26 = vmul.f32 %v1407_v25, %v1400_v24 }
0x15d7   :  { %1411 = vrot.lane.b32.xlu0 %v1409_v26, %s2166_s10 }
0x1649   :  { %v1412_v31 = vpop.permute.xlu0 %1411 }
0x164a   :  { %v1414_v32 = vadd.f32 %v1412_v31, %v1404_v29 }
0x164c   :  { %2088 = vtanh.f32 %v1414_v32 }
0x1656   :  { %v2089_v34 = vpop.eup %2088 }
0x1657   :  { %1417 = vrot.lane.b32.xlu1 %v2089_v34, %s2165_s1 }
0x16c9   :  { %v1418_v35 = vpop.permute.xlu1 %1417 }
0x16ca   :  { %v1420_v38 = vmul.f32 %v1418_v35, %v1400_v24 }
0x16cc   :  { %v1421_v39 = vpack.c.bf16 %v1420_v38, %v1420_v38 }
0x16ce   :  { %v1429_v40 = vrot.slane %v1421_v39, 1 }
0x16d0   :  { %1430 = vrot.lane.b32.xlu0 %v1429_v40, %s2166_s10 }
0x1742   :  { %v1431_v41 = vpop.permute.xlu0 %1430 }
0x1743   :  { %1840 = vmatmul.mubr.msk.bf16.vlgmr.msra.gmra.mrb[36].mxu1 %vm768_vm0, %v1431_v41 }
0x1816   :  { %v1469_v42 = vpop.f32.mrb[36].mxu1 }
0x1817   :  { %v1476_v43 = vrot.slane %v1469_v42, 4  ;;  %v1841_v45 = vpop.f32.mrb[37].mxu1 }
0x1818   :  { %v1472_v46 = vpop.f32.mrb[38].mxu1 }
0x1819   :  { %v1478_v47 = vadd.f32 %v1476_v43, %v2366_v57  ;;  %v1842_v55 = vpop.f32.mrb[39].mxu1  ;;  %v1485_v57 = vrot.slane %v1414_v32, 6 }
0x181b   :  { %v1479_v48 = vmul.f32 %v1478_v47, %v2374_v61 }
0x181d   :  { %2090 = vtanh.f32 %v1479_v48 }
0x1827   :  { %v2091_v49 = vpop.eup %2090 }
0x1828   :  { %v1481_v54 = vmul.f32 0.5, %v2091_v49 }
0x182a   :  { %v1482_v27 = vadd.f32 0.5, %v1481_v54 }
0x182c   :  { %v1483_v30 = vsel %vm2368_vm14, %v2091_v49, %v1482_v27 }
0x182d   :  { %1489 = vrot.lane.b32.xlu1 %v1483_v30, %s2165_s1  ;;  %v1487_v59 = vmul.f32 %v1485_v57, %v1483_v30 }
0x189f   :  { %v1490_v56 = vpop.permute.xlu1 %1489 }
0x18a0   :  { %v1492_v0 = vmul.f32 %v1490_v56, %v1483_v30 }
0x18a2   :  { %1494 = vrot.lane.b32.xlu0 %v1492_v0, %s2166_s10 }
0x18a6   :  { %929 = vrot.lane.b32.xlu0 %v2382_v53, %s2166_s10 }
0x18aa   :  { %1089 = vrot.lane.b32.xlu0 %v2420_v63, %s2166_s10 }
0x18ae   :  { %1259 = vrot.lane.b32.xlu0 %v2458_v50, %s2166_s10 }
0x18b2   :  { %1423 = vrot.lane.b32.xlu0 %v1420_v38, %s2166_s10 }
0x1914   :  { %v1495_v61 = vpop.permute.xlu0 %1494 }
0x1915   :  { %v1497_v58 = vadd.f32 %v1495_v61, %v1487_v59 }
0x1917   :  { %2092 = vtanh.f32 %v1497_v58 }
0x1918   :  { %v930_v60 = vpop.permute.xlu0 %929 }
0x1919   :  { %933 = vst.msk [vmem:[#allocation2] sm:$0x1] %vm932_vm15, %v930_v60 }
0x191a   :  { %935 = vst.msk [vmem:[#allocation2 + $0x7] sm:$0x2] %vm934_vm1, %v930_v60 }
0x191c   :  { %v1090_v53 = vpop.permute.xlu0 %1089 }
0x191d   :  { %1093 = vst.msk [vmem:[#allocation2] sm:$0x4] %vm1092_vm2, %v1090_v53 }
0x191e   :  { %1095 = vst.msk [vmem:[#allocation2 + $0x7] sm:$0x8] %vm1094_vm3, %v1090_v53 }
0x1920   :  { %v1260_v63 = vpop.permute.xlu0 %1259 }
0x1921   :  { %v2093_v50 = vpop.eup %2092  ;;  %1263 = vst.msk [vmem:[#allocation2 - $0x2] sm:$0x40] %vm1262_vm5, %v1260_v63 }
0x1922   :  { %1265 = vst.msk [vmem:[#allocation2 + $0x5] sm:$0x80] %vm1264_vm6, %v1260_v63  ;;  %1500 = vrot.lane.b32.xlu1 %v2093_v50, %s2165_s1 }
0x1924   :  { %v1424_v51 = vpop.permute.xlu0 %1423 }
0x1925   :  { %1426 = vst.msk [vmem:[#allocation2 + $0x4] sm:$0x4] %vm1092_vm2, %v1424_v51 }
0x1926   :  { %1427 = vst.msk [vmem:[#allocation2 + $0xb] sm:$0x8] %vm1094_vm3, %v1424_v51  ;;  %1007 = vrot.lane.b32.xlu1 %v2401_v37, %s2166_s10 }
0x192a   :  { %1174 = vrot.lane.b32.xlu1 %v2439_v22, %s2166_s10 }
0x192e   :  { %1341 = vrot.lane.b32.xlu1 %v2476_v10, %s2166_s10 }
0x1994   :  { %v1501_v3 = vpop.permute.xlu1 %1500 }
0x1995   :  { %v1503_v36 = vmul.f32 %v1501_v3, %v1483_v30 }
0x1997   :  { %1505 = vrot.lane.b32.xlu1 %v1503_v36, %s2166_s10 }
0x1998   :  { %v1008_v37 = vpop.permute.xlu1 %1007 }
0x1999   :  { %1010 = vst.msk [vmem:[#allocation2 + $0x1] sm:$0x1] %vm932_vm15, %v1008_v37 }
0x199a   :  { %1011 = vst.msk [vmem:[#allocation2 + $0x8] sm:$0x2] %vm934_vm1, %v1008_v37 }
0x199c   :  { %v1175_v22 = vpop.permute.xlu1 %1174 }
0x199d   :  { %1178 = vst.msk [vmem:[#allocation2 - $0x1] sm:$0x10] %vm1177_vm7, %v1175_v22 }
0x199e   :  { %1180 = vst.msk [vmem:[#allocation2 + $0x6] sm:$0x20] %vm1179_vm8, %v1175_v22 }
0x19a0   :  { %v1342_v5 = vpop.permute.xlu1 %1341 }
0x19a1   :  { %1344 = vst.msk [vmem:[#allocation2 + $0x5] sm:$0x1] %vm932_vm15, %v1342_v5 }
0x19a2   :  { %1345 = vst.msk [vmem:[#allocation2 + $0xc] sm:$0x2] %vm934_vm1, %v1342_v5 }
0x1a09   :  { %v1506_v4 = vpop.permute.xlu1 %1505 }
0x1a0a   :  { %1508 = vst.msk [vmem:[#allocation2 + $0x3] sm:$0x10] %vm1177_vm7, %v1506_v4 }
0x1a0b   :  { %1509 = vst.msk [vmem:[#allocation2 + $0xa] sm:$0x20] %vm1179_vm8, %v1506_v4 }
0x1a11   :  { %v1510_v6 = vld [vmem:[#allocation2] sm:$0xff] }
0x1a12   :  { %v1511_v7 = vld [vmem:[#allocation2 + $0x8] sm:$0xff] }
0x1a13   :  { %v1512_v8 = vpack.c.bf16 %v1511_v7, %v1510_v6 }
0x1a15   :  { %1848 = vmatmul.mubr.msk.bf16.vlgmr.msra.gmra.mrb[40].mxu0 %vm768_vm0, %v1512_v8 }
0x1ae8   :  { %v1554_v10 = vpop.f32.mrb[40].mxu0 }
0x1ae9   :  { %v1555_v11 = vadd.f32 %v1667_v9, %v1554_v10  ;;  %v1849_v12 = vpop.f32.mrb[41].mxu0 }
0x1aea   :  { %v1557_v13 = vpop.f32.mrb[42].mxu0 }
0x1aeb   :  { %1561 = vst.msk [vmem:[#allocation8] sm:$0xff] %vm576_vm4, %v1555_v11  ;;  %v1558_v14 = vadd.f32 %v1667_v9, %v1557_v13  ;;  %v1850_v15 = vpop.f32.mrb[43].mxu0 }
0x1aed   :  { %1562 = vst.msk [vmem:[#allocation8 + $0x8] sm:$0xff] %vm576_vm4, %v1558_v14 }
0x1aee   :  { %2139 = shalt.err (!%p2136_p3)
}
0x1aef   :  { %s2140_s16 = scalar_lea.hbm %s2542_s3, 256 }
0x1af0   :  { %p2141_p4 = scmp.ne.s32.totalorder %s2542_s3, %s2140_s16  ;;  %p2144_p5 = scmp.lt.u32.totalorder %s2140_s16, %s2542_s3 }
0x1af2   :  { %p2146_p6 = pnand %p2144_p5, %p2141_p4 }
0x1af4   :  { %2149 = shalt.err (!%p2146_p6)
}
0x1af5   :  { %1574 = dma.vmem_to_hbm [thread:$0]  %s1569_s12, 256, %s2542_s3, [#allocation7], %s2158_s26, %s2158_s26, %s2159_s27  }
0x1af6   :  { %2154 = dma.done.wait [#allocation7], 256  }
0x1af7   :  { %2155 = vsyncadd [#allocation7], 4294967040 }
0x1af8   :  { %1578 = vsyncpa [#allocation6], 1 }
0x1af9   :  { %1579 = vsyncpa [#allocation7], 1 }

</bundles_post_ra>
